<compile_context>
chip_gen: v5e
topology: v5e:2x2
jax: 0.10.0
libtpu: 0.0.40
codegen_flags: <defaults>
</compile_context>

<pallas_src>
import functools
import math

import jax
import jax.numpy as jnp
from jax import lax
from jax.experimental import pallas as pl
from jax.experimental.pallas import tpu as pltpu


# "NT" dot: a @ b.T without an explicit in-kernel transpose.
_NT_DIMS = (((1,), (1,)), ((), ()))


# ----------------------------- kernel -----------------------------

def _decoder_kernel(num_heads,
                    x_ref, en_ref, mask_ref, wqkv_ref, wo_ref, bqkv_ref, pd_ref,
                    out_ref):
    N, D = x_ref.shape                 # N = Bt * S rows of this grid step
    H = num_heads
    hd = D // H
    scale = 1.0 / math.sqrt(hd)

    x = x_ref[...].astype(jnp.float32)        # (N, D)
    en = en_ref[...].astype(jnp.float32)      # (N, D)
    mask = mask_ref[...]                      # (N, N) additive f32 (0 / -1e9)
    bqkv = bqkv_ref[...].astype(jnp.float32)  # (2, 3D) in-proj biases
    pd = pd_ref[...].astype(jnp.float32)      # (10, D) LN params + D-sized biases

    def layer_norm(t, g, b):
        mu = jnp.mean(t, axis=-1, keepdims=True)
        var = jnp.mean((t - mu) ** 2, axis=-1, keepdims=True)
        return (t - mu) * lax.rsqrt(var + 1e-5) * g + b

    def mha(q_src, kv_src, w_in, b_in, w_out, b_out, fused_qkv):
        # q_src/kv_src: (N, D) f32.  w_in: (D, 3D) bf16 (pre-transposed).
        # b_in: (1, 3D) f32.  w_out: (D, D) bf16 (pre-transposed).  b_out: (1, D) f32.
        if fused_qkv:
            qkv = jnp.dot(q_src.astype(jnp.bfloat16), w_in,
                          preferred_element_type=jnp.float32) + b_in
            q, k, v = qkv[:, :D], qkv[:, D:2 * D], qkv[:, 2 * D:]
        else:
            q = jnp.dot(q_src.astype(jnp.bfloat16), w_in[:, :D],
                        preferred_element_type=jnp.float32) + b_in[:, :D]
            kv = jnp.dot(kv_src.astype(jnp.bfloat16), w_in[:, D:],
                         preferred_element_type=jnp.float32) + b_in[:, D:]
            k, v = kv[:, :D], kv[:, D:]

        qb = (q * scale).astype(jnp.bfloat16)   # fold 1/sqrt(hd) into q (f32), then cast
        kb = k.astype(jnp.bfloat16)
        vb = v.astype(jnp.bfloat16)

        heads = []
        for h in range(H):                      # static short loop; each dot spans N rows
            sl = slice(h * hd, (h + 1) * hd)
            s = lax.dot_general(qb[:, sl], kb[:, sl], _NT_DIMS,
                                preferred_element_type=jnp.float32)   # (N, N) f32
            s = s + mask                         # mask stays f32 (bf16-safe)
            s = s - jnp.max(s, axis=-1, keepdims=True)
            e = jnp.exp(s)
            p = e * pl.reciprocal(jnp.sum(e, axis=-1, keepdims=True), approx=True)
            heads.append(jnp.dot(p.astype(jnp.bfloat16), vb[:, sl],
                                 preferred_element_type=jnp.float32))
        o = jnp.concatenate(heads, axis=-1).astype(jnp.bfloat16)      # (N, D)
        return jnp.dot(o, w_out, preferred_element_type=jnp.float32) + b_out

    # --- block 1: layer_norm1 + causal self-attention + residual ---
    out = layer_norm(x, pd[0:1], pd[1:2])
    skip = out
    out = mha(out, out, wqkv_ref[0], bqkv[0:1], wo_ref[0], pd[6:7], fused_qkv=True)
    out = out + skip                    # dropout1 == identity (eval)

    # --- block 2: layer_norm2(encoder) + causal cross-attention + residual ---
    en_n = layer_norm(en, pd[2:3], pd[3:4])
    skip = out
    out = mha(out, en_n, wqkv_ref[1], bqkv[1:2], wo_ref[1], pd[7:8], fused_qkv=False)
    out = out + skip                    # dropout2 == identity (eval)

    # --- block 3: layer_norm3 + FFN (Linear->ReLU->Linear) + residual ---
    out = layer_norm(out, pd[4:5], pd[5:6])
    skip = out
    h1 = jnp.dot(out.astype(jnp.bfloat16), wo_ref[2],
                 preferred_element_type=jnp.float32) + pd[8:9]
    h1 = jnp.maximum(h1, 0.0)
    out = jnp.dot(h1.astype(jnp.bfloat16), wo_ref[3],
                  preferred_element_type=jnp.float32) + pd[9:10]
    out = out + skip                    # dropout3 == identity (eval)

    out_ref[...] = out.astype(out_ref.dtype)


# ------------------------------ JAX wrapper --------------------------------

def _choose_bt(B, S, target_rows=128, max_rows=512):
    """Largest divisor Bt of B with Bt*S <= max_rows, preferring Bt*S >= target_rows."""
    best = 1
    for bt in range(1, B + 1):
        if B % bt:
            continue
        if bt * S <= max_rows:
            best = bt
        if bt * S >= target_rows:
            break
    return best


def _build_mask(Bt, S):
    """Additive f32 mask over N=Bt*S flattened rows: block-diagonal per batch
    element AND causal (strict upper triangle masked) inside each block."""
    N = Bt * S
    idx = jnp.arange(N)
    b = idx // S
    t = idx % S
    allowed = (b[:, None] == b[None, :]) & (t[None, :] <= t[:, None])
    return jnp.where(allowed, 0.0, -1e9).astype(jnp.float32)


def _zero_map(ndim, b):
    return (0,) * ndim


def decoder_block_forward(in_res, in_pos, en_out, params, num_heads, first_block=True):
    if first_block:
        x = jnp.take(params["emb_res"], in_res, axis=0) + in_pos
    else:
        x = in_res
    x = x.astype(jnp.float32)
    en_out = en_out.astype(jnp.float32)
    B, S, D = x.shape

    Bt = _choose_bt(B, S)
    N = Bt * S

    # Flatten activations to lane-dense 2-D slabs; the kernel never reshapes.
    x2 = x.reshape(B * S, D)
    en2 = en_out.reshape(B * S, D)

    # Pack weights: pre-transposed to (in, out) and cast to bf16 (MXU operands).
    w_qkv = jnp.stack([params["attn1_w_in"].T,
                       params["attn2_w_in"].T]).astype(jnp.bfloat16)        # (2, D, 3D)
    w_o = jnp.stack([params["attn1_w_out"].T, params["attn2_w_out"].T,
                     params["ffn_w1"].T, params["ffn_w2"].T]).astype(jnp.bfloat16)  # (4, D, D)
    b_qkv = jnp.stack([params["attn1_b_in"],
                       params["attn2_b_in"]]).astype(jnp.float32)           # (2, 3D)
    p_d = jnp.stack([params["ln1_g"], params["ln1_b"],
                     params["ln2_g"], params["ln2_b"],
                     params["ln3_g"], params["ln3_b"],
                     params["attn1_b_out"], params["attn2_b_out"],
                     params["ffn_b1"], params["ffn_b2"]]).astype(jnp.float32)  # (10, D)
    mask = _build_mask(Bt, S)                                               # (N, N)

    act_spec = pl.BlockSpec((N, D), lambda b: (b, 0))
    weights = [mask, w_qkv, w_o, b_qkv, p_d]
    w_specs = [pl.BlockSpec(w.shape, functools.partial(_zero_map, w.ndim)) for w in weights]

    out2 = pl.pallas_call(
        functools.partial(_decoder_kernel, num_heads),
        out_shape=jax.ShapeDtypeStruct((B * S, D), jnp.float32),
        grid=(B // Bt,),
        in_specs=[act_spec, act_spec] + w_specs,
        out_specs=act_spec,
        compiler_params=pltpu.CompilerParams(dimension_semantics=("parallel",)),
    )(x2, en2, *weights)
    return out2.reshape(B, S, D)


def init_params(key, dim_model, total_res):
    D = dim_model
    ks = jax.random.split(key, 9)
    lin = 1.0 / math.sqrt(D)

    def u(k, shape):
        return jax.random.uniform(k, shape, jnp.float32, -lin, lin)

    return {
        "emb_res": jax.random.normal(ks[0], (total_res + 1, D), jnp.float32),
        "ln1_g": jnp.ones((D,), jnp.float32), "ln1_b": jnp.zeros((D,), jnp.float32),
        "ln2_g": jnp.ones((D,), jnp.float32), "ln2_b": jnp.zeros((D,), jnp.float32),
        "ln3_g": jnp.ones((D,), jnp.float32), "ln3_b": jnp.zeros((D,), jnp.float32),
        "attn1_w_in": u(ks[1], (3 * D, D)), "attn1_b_in": jnp.zeros((3 * D,), jnp.float32),
        "attn1_w_out": u(ks[2], (D, D)), "attn1_b_out": jnp.zeros((D,), jnp.float32),
        "attn2_w_in": u(ks[3], (3 * D, D)), "attn2_b_in": jnp.zeros((3 * D,), jnp.float32),
        "attn2_w_out": u(ks[4], (D, D)), "attn2_b_out": jnp.zeros((D,), jnp.float32),
        "ffn_w1": u(ks[5], (D, D)), "ffn_b1": u(ks[6], (D,)),
        "ffn_w2": u(ks[7], (D, D)), "ffn_b2": u(ks[8], (D,)),
    }


# --------------------------- pure-JAX reference -----------------------------

def _ref_mha(q, k, v, w_in, b_in, w_out, b_out, mask, H):
    B, S, D = q.shape
    hd = D // H
    qp = q @ w_in[:D].T + b_in[:D]
    kp = k @ w_in[D:2 * D].T + b_in[D:2 * D]
    vp = v @ w_in[2 * D:].T + b_in[2 * D:]
    qh = qp.reshape(B, S, H, hd).transpose(0, 2, 1, 3)
    kh = kp.reshape(B, S, H, hd).transpose(0, 2, 1, 3)
    vh = vp.reshape(B, S, H, hd).transpose(0, 2, 1, 3)
    s = jnp.einsum("bhqd,bhkd->bhqk", qh, kh) / math.sqrt(hd)
    s = jnp.where(mask, -1e30, s)
    p = jax.nn.softmax(s, axis=-1)
    o = jnp.einsum("bhqk,bhkd->bhqd", p, vh).transpose(0, 2, 1, 3).reshape(B, S, D)
    return o @ w_out.T + b_out


def _ref_forward(in_res, in_pos, en_out, params, H):
    x = params["emb_res"][in_res] + in_pos
    B, S, D = x.shape
    mask = jnp.triu(jnp.ones((S, S), bool), k=1)
    ln = lambda t, g, b: (t - t.mean(-1, keepdims=True)) * lax.rsqrt(
        t.var(-1, keepdims=True) + 1e-5) * g + b
    out = ln(x, params["ln1_g"], params["ln1_b"])
    out = _ref_mha(out, out, out, params["attn1_w_in"], params["attn1_b_in"],
                   params["attn1_w_out"], params["attn1_b_out"], mask, H) + out
    en = ln(en_out, params["ln2_g"], params["ln2_b"])
    out = _ref_mha(out, en, en, params["attn2_w_in"], params["attn2_b_in"],
                   params["attn2_w_out"], params["attn2_b_out"], mask, H) + out
    out = ln(out, params["ln3_g"], params["ln3_b"])
    h = jax.nn.relu(out @ params["ffn_w1"].T + params["ffn_b1"])
    return h @ params["ffn_w2"].T + params["ffn_b2"] + out


# --------------------------------- main -------------------------------------

if __name__ == "__main__":
    B, S, D, H, TOTAL_RES = 2, 8, 32, 4, 2  # dim_model=32, heads_de=4, seq_len=8

    key = jax.random.PRNGKey(0)
    kp, k1, k2, k3 = jax.random.split(key, 4)
    params = init_params(kp, D, TOTAL_RES)

    in_res = jax.random.randint(k1, (B, S), 0, TOTAL_RES + 1)       # response ids
    in_pos = jax.random.normal(k2, (B, S, D), jnp.float32)          # positional emb
    en_out = jax.random.normal(k3, (B, S, D), jnp.float32)          # encoder output

    out = decoder_block_forward(in_res, in_pos, en_out, params, H, first_block=True)
    out = jax.block_until_ready(out)
    assert out.shape == (B, S, D)

    ref = _ref_forward(in_res, in_pos, en_out, params, H)
    max_err = float(jnp.max(jnp.abs(out - ref)))
    # bf16 MXU operands with f32 accumulation: small tolerance vs f32 reference.
    assert jnp.allclose(out, ref, atol=2e-2, rtol=2e-2), f"max_err={max_err}"

    print("KERNEL_OK")
</pallas_src>

<mosaic_0001>
module attributes {stable_mosaic.version = 11 : i64} {
  func.func @_decoder_kernel(%arg0: i32, %arg1: memref<16x32xf32, #tpu.memory_space<vmem>>, %arg2: memref<16x32xf32, #tpu.memory_space<vmem>>, %arg3: memref<16x16xf32, #tpu.memory_space<vmem>>, %arg4: memref<2x32x96xbf16, #tpu.memory_space<vmem>>, %arg5: memref<4x32x32xbf16, #tpu.memory_space<vmem>>, %arg6: memref<2x96xf32, #tpu.memory_space<vmem>>, %arg7: memref<10x32xf32, #tpu.memory_space<vmem>>, %arg8: memref<16x32xf32, #tpu.memory_space<vmem>>) attributes {dimension_semantics = [#tpu.dimension_semantics<parallel>], iteration_bounds = array<i64: 1>, scalar_prefetch = 0 : i64, scratch_operands = 0 : i64, tpu.core_type = #tpu.core_type<tc>, window_params = [{transform_indices = @transform_0, window_bounds = array<i64: 16, 32>}, {transform_indices = @transform_1, window_bounds = array<i64: 16, 32>}, {pipeline_mode = #tpu.pipeline_mode<synchronous>, transform_indices = @transform_2, window_bounds = array<i64: 16, 16>}, {pipeline_mode = #tpu.pipeline_mode<synchronous>, transform_indices = @transform_3, window_bounds = array<i64: 2, 32, 96>}, {pipeline_mode = #tpu.pipeline_mode<synchronous>, transform_indices = @transform_4, window_bounds = array<i64: 4, 32, 32>}, {pipeline_mode = #tpu.pipeline_mode<synchronous>, transform_indices = @transform_5, window_bounds = array<i64: 2, 96>}, {pipeline_mode = #tpu.pipeline_mode<synchronous>, transform_indices = @transform_6, window_bounds = array<i64: 10, 32>}, {transform_indices = @transform_7, window_bounds = array<i64: 16, 32>}]} {
    %c0 = arith.constant 0 : index
    %c0_0 = arith.constant 0 : index
    %0 = vector.load %arg1[%c0, %c0_0] : memref<16x32xf32, #tpu.memory_space<vmem>>, vector<16x32xf32>
    %c0_1 = arith.constant 0 : index
    %c0_2 = arith.constant 0 : index
    %1 = vector.load %arg2[%c0_1, %c0_2] : memref<16x32xf32, #tpu.memory_space<vmem>>, vector<16x32xf32>
    %c0_3 = arith.constant 0 : index
    %c0_4 = arith.constant 0 : index
    %2 = vector.load %arg3[%c0_3, %c0_4] : memref<16x16xf32, #tpu.memory_space<vmem>>, vector<16x16xf32>
    %c0_5 = arith.constant 0 : index
    %c0_6 = arith.constant 0 : index
    %3 = vector.load %arg6[%c0_5, %c0_6] : memref<2x96xf32, #tpu.memory_space<vmem>>, vector<2x96xf32>
    %c0_7 = arith.constant 0 : index
    %c0_8 = arith.constant 0 : index
    %4 = vector.load %arg7[%c0_7, %c0_8] : memref<10x32xf32, #tpu.memory_space<vmem>>, vector<10x32xf32>
    %5 = vector.extract_strided_slice %4 {offsets = [0, 0], sizes = [1, 32], strides = [1, 1]} : vector<10x32xf32> to vector<1x32xf32>
    %6 = vector.extract_strided_slice %4 {offsets = [1, 0], sizes = [1, 32], strides = [1, 1]} : vector<10x32xf32> to vector<1x32xf32>
    %cst = arith.constant dense<0.000000e+00> : vector<16xf32>
    %7 = vector.multi_reduction <add>, %0, %cst [1] : vector<16x32xf32> to vector<16xf32>
    %8 = vector.shape_cast %7 : vector<16xf32> to vector<16x1xf32>
    %cst_9 = arith.constant 3.200000e+01 : f32
    %9 = vector.broadcast %cst_9 : f32 to vector<16x1xf32>
    %10 = arith.divf %8, %9 : vector<16x1xf32>
    %11 = vector.broadcast %10 : vector<16x1xf32> to vector<16x32xf32>
    %12 = arith.subf %0, %11 : vector<16x32xf32>
    %13 = arith.mulf %12, %12 : vector<16x32xf32>
    %cst_10 = arith.constant dense<0.000000e+00> : vector<16xf32>
    %14 = vector.multi_reduction <add>, %13, %cst_10 [1] : vector<16x32xf32> to vector<16xf32>
    %15 = vector.shape_cast %14 : vector<16xf32> to vector<16x1xf32>
    %cst_11 = arith.constant 3.200000e+01 : f32
    %16 = vector.broadcast %cst_11 : f32 to vector<16x1xf32>
    %17 = arith.divf %15, %16 : vector<16x1xf32>
    %18 = vector.broadcast %10 : vector<16x1xf32> to vector<16x32xf32>
    %19 = arith.subf %0, %18 : vector<16x32xf32>
    %cst_12 = arith.constant 9.99999974E-6 : f32
    %20 = vector.broadcast %cst_12 : f32 to vector<16x1xf32>
    %21 = arith.addf %17, %20 : vector<16x1xf32>
    %22 = math.rsqrt %21 : vector<16x1xf32>
    %23 = vector.broadcast %22 : vector<16x1xf32> to vector<16x32xf32>
    %24 = arith.mulf %19, %23 : vector<16x32xf32>
    %25 = vector.broadcast %5 : vector<1x32xf32> to vector<16x32xf32>
    %26 = arith.mulf %24, %25 : vector<16x32xf32>
    %27 = vector.broadcast %6 : vector<1x32xf32> to vector<16x32xf32>
    %28 = arith.addf %26, %27 : vector<16x32xf32>
    %c0_13 = arith.constant 0 : index
    %c0_14 = arith.constant 0 : index
    %c0_15 = arith.constant 0 : index
    %29 = vector.load %arg4[%c0_13, %c0_14, %c0_15] : memref<2x32x96xbf16, #tpu.memory_space<vmem>>, vector<1x32x96xbf16>
    %30 = vector.shape_cast %29 : vector<1x32x96xbf16> to vector<32x96xbf16>
    %31 = vector.extract_strided_slice %3 {offsets = [0, 0], sizes = [1, 96], strides = [1, 1]} : vector<2x96xf32> to vector<1x96xf32>
    %c0_16 = arith.constant 0 : index
    %c0_17 = arith.constant 0 : index
    %c0_18 = arith.constant 0 : index
    %32 = vector.load %arg5[%c0_16, %c0_17, %c0_18] : memref<4x32x32xbf16, #tpu.memory_space<vmem>>, vector<1x32x32xbf16>
    %33 = vector.shape_cast %32 : vector<1x32x32xbf16> to vector<32x32xbf16>
    %34 = vector.extract_strided_slice %4 {offsets = [6, 0], sizes = [1, 32], strides = [1, 1]} : vector<10x32xf32> to vector<1x32xf32>
    %35 = arith.truncf %28 : vector<16x32xf32> to vector<16x32xbf16>
    %cst_19 = arith.constant dense<0.000000e+00> : vector<16x96xf32>
    %36 = tpu.matmul %35, %30, %cst_19 {dimension_numbers = #tpu.dot_dimension_numbers<[1], [0], [0], [1], [0, 0, 1, 1], [], []>} : vector<16x32xbf16>, vector<32x96xbf16>, vector<16x96xf32> -> vector<16x96xf32>
    %37 = vector.broadcast %31 : vector<1x96xf32> to vector<16x96xf32>
    %38 = arith.addf %36, %37 : vector<16x96xf32>
    %39 = vector.extract_strided_slice %38 {offsets = [0, 0], sizes = [16, 32], strides = [1, 1]} : vector<16x96xf32> to vector<16x32xf32>
    %40 = vector.extract_strided_slice %38 {offsets = [0, 32], sizes = [16, 32], strides = [1, 1]} : vector<16x96xf32> to vector<16x32xf32>
    %41 = vector.extract_strided_slice %38 {offsets = [0, 64], sizes = [16, 32], strides = [1, 1]} : vector<16x96xf32> to vector<16x32xf32>
    %cst_20 = arith.constant 0.353553385 : f32
    %42 = vector.broadcast %cst_20 : f32 to vector<16x32xf32>
    %43 = arith.mulf %39, %42 : vector<16x32xf32>
    %44 = arith.truncf %43 : vector<16x32xf32> to vector<16x32xbf16>
    %45 = arith.truncf %40 : vector<16x32xf32> to vector<16x32xbf16>
    %46 = arith.truncf %41 : vector<16x32xf32> to vector<16x32xbf16>
    %47 = vector.extract_strided_slice %44 {offsets = [0, 0], sizes = [16, 8], strides = [1, 1]} : vector<16x32xbf16> to vector<16x8xbf16>
    %48 = vector.extract_strided_slice %45 {offsets = [0, 0], sizes = [16, 8], strides = [1, 1]} : vector<16x32xbf16> to vector<16x8xbf16>
    %cst_21 = arith.constant dense<0.000000e+00> : vector<16x16xf32>
    %49 = tpu.matmul %47, %48, %cst_21 {dimension_numbers = #tpu.dot_dimension_numbers<[1], [1], [0], [0], [0, 0, 1, 0], [], []>} : vector<16x8xbf16>, vector<16x8xbf16>, vector<16x16xf32> -> vector<16x16xf32>
    %50 = arith.addf %49, %2 : vector<16x16xf32>
    %cst_22 = arith.constant dense<0xFF800000> : vector<16xf32>
    %51 = vector.multi_reduction <maximumf>, %50, %cst_22 [1] : vector<16x16xf32> to vector<16xf32>
    %52 = vector.shape_cast %51 : vector<16xf32> to vector<16x1xf32>
    %53 = vector.broadcast %52 : vector<16x1xf32> to vector<16x16xf32>
    %54 = arith.subf %50, %53 : vector<16x16xf32>
    %55 = math.exp %54 : vector<16x16xf32>
    %cst_23 = arith.constant dense<0.000000e+00> : vector<16xf32>
    %56 = vector.multi_reduction <add>, %55, %cst_23 [1] : vector<16x16xf32> to vector<16xf32>
    %57 = vector.shape_cast %56 : vector<16xf32> to vector<16x1xf32>
    %58 = tpu.reciprocal %57 {approx = true} : vector<16x1xf32> -> vector<16x1xf32>
    %59 = vector.broadcast %58 : vector<16x1xf32> to vector<16x16xf32>
    %60 = arith.mulf %55, %59 : vector<16x16xf32>
    %61 = arith.truncf %60 : vector<16x16xf32> to vector<16x16xbf16>
    %62 = vector.extract_strided_slice %46 {offsets = [0, 0], sizes = [16, 8], strides = [1, 1]} : vector<16x32xbf16> to vector<16x8xbf16>
    %cst_24 = arith.constant dense<0.000000e+00> : vector<16x8xf32>
    %63 = tpu.matmul %61, %62, %cst_24 {dimension_numbers = #tpu.dot_dimension_numbers<[1], [0], [0], [1], [0, 0, 1, 1], [], []>} : vector<16x16xbf16>, vector<16x8xbf16>, vector<16x8xf32> -> vector<16x8xf32>
    %64 = vector.extract_strided_slice %44 {offsets = [0, 8], sizes = [16, 8], strides = [1, 1]} : vector<16x32xbf16> to vector<16x8xbf16>
    %65 = vector.extract_strided_slice %45 {offsets = [0, 8], sizes = [16, 8], strides = [1, 1]} : vector<16x32xbf16> to vector<16x8xbf16>
    %cst_25 = arith.constant dense<0.000000e+00> : vector<16x16xf32>
    %66 = tpu.matmul %64, %65, %cst_25 {dimension_numbers = #tpu.dot_dimension_numbers<[1], [1], [0], [0], [0, 0, 1, 0], [], []>} : vector<16x8xbf16>, vector<16x8xbf16>, vector<16x16xf32> -> vector<16x16xf32>
    %67 = arith.addf %66, %2 : vector<16x16xf32>
    %cst_26 = arith.constant dense<0xFF800000> : vector<16xf32>
    %68 = vector.multi_reduction <maximumf>, %67, %cst_26 [1] : vector<16x16xf32> to vector<16xf32>
    %69 = vector.shape_cast %68 : vector<16xf32> to vector<16x1xf32>
    %70 = vector.broadcast %69 : vector<16x1xf32> to vector<16x16xf32>
    %71 = arith.subf %67, %70 : vector<16x16xf32>
    %72 = math.exp %71 : vector<16x16xf32>
    %cst_27 = arith.constant dense<0.000000e+00> : vector<16xf32>
    %73 = vector.multi_reduction <add>, %72, %cst_27 [1] : vector<16x16xf32> to vector<16xf32>
    %74 = vector.shape_cast %73 : vector<16xf32> to vector<16x1xf32>
    %75 = tpu.reciprocal %74 {approx = true} : vector<16x1xf32> -> vector<16x1xf32>
    %76 = vector.broadcast %75 : vector<16x1xf32> to vector<16x16xf32>
    %77 = arith.mulf %72, %76 : vector<16x16xf32>
    %78 = arith.truncf %77 : vector<16x16xf32> to vector<16x16xbf16>
    %79 = vector.extract_strided_slice %46 {offsets = [0, 8], sizes = [16, 8], strides = [1, 1]} : vector<16x32xbf16> to vector<16x8xbf16>
    %cst_28 = arith.constant dense<0.000000e+00> : vector<16x8xf32>
    %80 = tpu.matmul %78, %79, %cst_28 {dimension_numbers = #tpu.dot_dimension_numbers<[1], [0], [0], [1], [0, 0, 1, 1], [], []>} : vector<16x16xbf16>, vector<16x8xbf16>, vector<16x8xf32> -> vector<16x8xf32>
    %81 = vector.extract_strided_slice %44 {offsets = [0, 16], sizes = [16, 8], strides = [1, 1]} : vector<16x32xbf16> to vector<16x8xbf16>
    %82 = vector.extract_strided_slice %45 {offsets = [0, 16], sizes = [16, 8], strides = [1, 1]} : vector<16x32xbf16> to vector<16x8xbf16>
    %cst_29 = arith.constant dense<0.000000e+00> : vector<16x16xf32>
    %83 = tpu.matmul %81, %82, %cst_29 {dimension_numbers = #tpu.dot_dimension_numbers<[1], [1], [0], [0], [0, 0, 1, 0], [], []>} : vector<16x8xbf16>, vector<16x8xbf16>, vector<16x16xf32> -> vector<16x16xf32>
    %84 = arith.addf %83, %2 : vector<16x16xf32>
    %cst_30 = arith.constant dense<0xFF800000> : vector<16xf32>
    %85 = vector.multi_reduction <maximumf>, %84, %cst_30 [1] : vector<16x16xf32> to vector<16xf32>
    %86 = vector.shape_cast %85 : vector<16xf32> to vector<16x1xf32>
    %87 = vector.broadcast %86 : vector<16x1xf32> to vector<16x16xf32>
    %88 = arith.subf %84, %87 : vector<16x16xf32>
    %89 = math.exp %88 : vector<16x16xf32>
    %cst_31 = arith.constant dense<0.000000e+00> : vector<16xf32>
    %90 = vector.multi_reduction <add>, %89, %cst_31 [1] : vector<16x16xf32> to vector<16xf32>
    %91 = vector.shape_cast %90 : vector<16xf32> to vector<16x1xf32>
    %92 = tpu.reciprocal %91 {approx = true} : vector<16x1xf32> -> vector<16x1xf32>
    %93 = vector.broadcast %92 : vector<16x1xf32> to vector<16x16xf32>
    %94 = arith.mulf %89, %93 : vector<16x16xf32>
    %95 = arith.truncf %94 : vector<16x16xf32> to vector<16x16xbf16>
    %96 = vector.extract_strided_slice %46 {offsets = [0, 16], sizes = [16, 8], strides = [1, 1]} : vector<16x32xbf16> to vector<16x8xbf16>
    %cst_32 = arith.constant dense<0.000000e+00> : vector<16x8xf32>
    %97 = tpu.matmul %95, %96, %cst_32 {dimension_numbers = #tpu.dot_dimension_numbers<[1], [0], [0], [1], [0, 0, 1, 1], [], []>} : vector<16x16xbf16>, vector<16x8xbf16>, vector<16x8xf32> -> vector<16x8xf32>
    %98 = vector.extract_strided_slice %44 {offsets = [0, 24], sizes = [16, 8], strides = [1, 1]} : vector<16x32xbf16> to vector<16x8xbf16>
    %99 = vector.extract_strided_slice %45 {offsets = [0, 24], sizes = [16, 8], strides = [1, 1]} : vector<16x32xbf16> to vector<16x8xbf16>
    %cst_33 = arith.constant dense<0.000000e+00> : vector<16x16xf32>
    %100 = tpu.matmul %98, %99, %cst_33 {dimension_numbers = #tpu.dot_dimension_numbers<[1], [1], [0], [0], [0, 0, 1, 0], [], []>} : vector<16x8xbf16>, vector<16x8xbf16>, vector<16x16xf32> -> vector<16x16xf32>
    %101 = arith.addf %100, %2 : vector<16x16xf32>
    %cst_34 = arith.constant dense<0xFF800000> : vector<16xf32>
    %102 = vector.multi_reduction <maximumf>, %101, %cst_34 [1] : vector<16x16xf32> to vector<16xf32>
    %103 = vector.shape_cast %102 : vector<16xf32> to vector<16x1xf32>
    %104 = vector.broadcast %103 : vector<16x1xf32> to vector<16x16xf32>
    %105 = arith.subf %101, %104 : vector<16x16xf32>
    %106 = math.exp %105 : vector<16x16xf32>
    %cst_35 = arith.constant dense<0.000000e+00> : vector<16xf32>
    %107 = vector.multi_reduction <add>, %106, %cst_35 [1] : vector<16x16xf32> to vector<16xf32>
    %108 = vector.shape_cast %107 : vector<16xf32> to vector<16x1xf32>
    %109 = tpu.reciprocal %108 {approx = true} : vector<16x1xf32> -> vector<16x1xf32>
    %110 = vector.broadcast %109 : vector<16x1xf32> to vector<16x16xf32>
    %111 = arith.mulf %106, %110 : vector<16x16xf32>
    %112 = arith.truncf %111 : vector<16x16xf32> to vector<16x16xbf16>
    %113 = vector.extract_strided_slice %46 {offsets = [0, 24], sizes = [16, 8], strides = [1, 1]} : vector<16x32xbf16> to vector<16x8xbf16>
    %cst_36 = arith.constant dense<0.000000e+00> : vector<16x8xf32>
    %114 = tpu.matmul %112, %113, %cst_36 {dimension_numbers = #tpu.dot_dimension_numbers<[1], [0], [0], [1], [0, 0, 1, 1], [], []>} : vector<16x16xbf16>, vector<16x8xbf16>, vector<16x8xf32> -> vector<16x8xf32>
    %115 = tpu.concatenate %63, %80, %97, %114 in 1 : vector<16x8xf32>, vector<16x8xf32>, vector<16x8xf32>, vector<16x8xf32> -> vector<16x32xf32>
    %116 = arith.truncf %115 : vector<16x32xf32> to vector<16x32xbf16>
    %cst_37 = arith.constant dense<0.000000e+00> : vector<16x32xf32>
    %117 = tpu.matmul %116, %33, %cst_37 {dimension_numbers = #tpu.dot_dimension_numbers<[1], [0], [0], [1], [0, 0, 1, 1], [], []>} : vector<16x32xbf16>, vector<32x32xbf16>, vector<16x32xf32> -> vector<16x32xf32>
    %118 = vector.broadcast %34 : vector<1x32xf32> to vector<16x32xf32>
    %119 = arith.addf %117, %118 : vector<16x32xf32>
    %120 = arith.addf %119, %28 : vector<16x32xf32>
    %121 = vector.extract_strided_slice %4 {offsets = [2, 0], sizes = [1, 32], strides = [1, 1]} : vector<10x32xf32> to vector<1x32xf32>
    %122 = vector.extract_strided_slice %4 {offsets = [3, 0], sizes = [1, 32], strides = [1, 1]} : vector<10x32xf32> to vector<1x32xf32>
    %cst_38 = arith.constant dense<0.000000e+00> : vector<16xf32>
    %123 = vector.multi_reduction <add>, %1, %cst_38 [1] : vector<16x32xf32> to vector<16xf32>
    %124 = vector.shape_cast %123 : vector<16xf32> to vector<16x1xf32>
    %cst_39 = arith.constant 3.200000e+01 : f32
    %125 = vector.broadcast %cst_39 : f32 to vector<16x1xf32>
    %126 = arith.divf %124, %125 : vector<16x1xf32>
    %127 = vector.broadcast %126 : vector<16x1xf32> to vector<16x32xf32>
    %128 = arith.subf %1, %127 : vector<16x32xf32>
    %129 = arith.mulf %128, %128 : vector<16x32xf32>
    %cst_40 = arith.constant dense<0.000000e+00> : vector<16xf32>
    %130 = vector.multi_reduction <add>, %129, %cst_40 [1] : vector<16x32xf32> to vector<16xf32>
    %131 = vector.shape_cast %130 : vector<16xf32> to vector<16x1xf32>
    %cst_41 = arith.constant 3.200000e+01 : f32
    %132 = vector.broadcast %cst_41 : f32 to vector<16x1xf32>
    %133 = arith.divf %131, %132 : vector<16x1xf32>
    %134 = vector.broadcast %126 : vector<16x1xf32> to vector<16x32xf32>
    %135 = arith.subf %1, %134 : vector<16x32xf32>
    %cst_42 = arith.constant 9.99999974E-6 : f32
    %136 = vector.broadcast %cst_42 : f32 to vector<16x1xf32>
    %137 = arith.addf %133, %136 : vector<16x1xf32>
    %138 = math.rsqrt %137 : vector<16x1xf32>
    %139 = vector.broadcast %138 : vector<16x1xf32> to vector<16x32xf32>
    %140 = arith.mulf %135, %139 : vector<16x32xf32>
    %141 = vector.broadcast %121 : vector<1x32xf32> to vector<16x32xf32>
    %142 = arith.mulf %140, %141 : vector<16x32xf32>
    %143 = vector.broadcast %122 : vector<1x32xf32> to vector<16x32xf32>
    %144 = arith.addf %142, %143 : vector<16x32xf32>
    %c1 = arith.constant 1 : index
    %c0_43 = arith.constant 0 : index
    %c0_44 = arith.constant 0 : index
    %145 = vector.load %arg4[%c1, %c0_43, %c0_44] : memref<2x32x96xbf16, #tpu.memory_space<vmem>>, vector<1x32x96xbf16>
    %146 = vector.shape_cast %145 : vector<1x32x96xbf16> to vector<32x96xbf16>
    %147 = vector.extract_strided_slice %3 {offsets = [1, 0], sizes = [1, 96], strides = [1, 1]} : vector<2x96xf32> to vector<1x96xf32>
    %c1_45 = arith.constant 1 : index
    %c0_46 = arith.constant 0 : index
    %c0_47 = arith.constant 0 : index
    %148 = vector.load %arg5[%c1_45, %c0_46, %c0_47] : memref<4x32x32xbf16, #tpu.memory_space<vmem>>, vector<1x32x32xbf16>
    %149 = vector.shape_cast %148 : vector<1x32x32xbf16> to vector<32x32xbf16>
    %150 = vector.extract_strided_slice %4 {offsets = [7, 0], sizes = [1, 32], strides = [1, 1]} : vector<10x32xf32> to vector<1x32xf32>
    %151 = arith.truncf %120 : vector<16x32xf32> to vector<16x32xbf16>
    %152 = vector.extract_strided_slice %146 {offsets = [0, 0], sizes = [32, 32], strides = [1, 1]} : vector<32x96xbf16> to vector<32x32xbf16>
    %cst_48 = arith.constant dense<0.000000e+00> : vector<16x32xf32>
    %153 = tpu.matmul %151, %152, %cst_48 {dimension_numbers = #tpu.dot_dimension_numbers<[1], [0], [0], [1], [0, 0, 1, 1], [], []>} : vector<16x32xbf16>, vector<32x32xbf16>, vector<16x32xf32> -> vector<16x32xf32>
    %154 = vector.extract_strided_slice %147 {offsets = [0, 0], sizes = [1, 32], strides = [1, 1]} : vector<1x96xf32> to vector<1x32xf32>
    %155 = vector.broadcast %154 : vector<1x32xf32> to vector<16x32xf32>
    %156 = arith.addf %153, %155 : vector<16x32xf32>
    %157 = arith.truncf %144 : vector<16x32xf32> to vector<16x32xbf16>
    %158 = vector.extract_strided_slice %146 {offsets = [0, 32], sizes = [32, 64], strides = [1, 1]} : vector<32x96xbf16> to vector<32x64xbf16>
    %cst_49 = arith.constant dense<0.000000e+00> : vector<16x64xf32>
    %159 = tpu.matmul %157, %158, %cst_49 {dimension_numbers = #tpu.dot_dimension_numbers<[1], [0], [0], [1], [0, 0, 1, 1], [], []>} : vector<16x32xbf16>, vector<32x64xbf16>, vector<16x64xf32> -> vector<16x64xf32>
    %160 = vector.extract_strided_slice %147 {offsets = [0, 32], sizes = [1, 64], strides = [1, 1]} : vector<1x96xf32> to vector<1x64xf32>
    %161 = vector.broadcast %160 : vector<1x64xf32> to vector<16x64xf32>
    %162 = arith.addf %159, %161 : vector<16x64xf32>
    %163 = vector.extract_strided_slice %162 {offsets = [0, 0], sizes = [16, 32], strides = [1, 1]} : vector<16x64xf32> to vector<16x32xf32>
    %164 = vector.extract_strided_slice %162 {offsets = [0, 32], sizes = [16, 32], strides = [1, 1]} : vector<16x64xf32> to vector<16x32xf32>
    %cst_50 = arith.constant 0.353553385 : f32
    %165 = vector.broadcast %cst_50 : f32 to vector<16x32xf32>
    %166 = arith.mulf %156, %165 : vector<16x32xf32>
    %167 = arith.truncf %166 : vector<16x32xf32> to vector<16x32xbf16>
    %168 = arith.truncf %163 : vector<16x32xf32> to vector<16x32xbf16>
    %169 = arith.truncf %164 : vector<16x32xf32> to vector<16x32xbf16>
    %170 = vector.extract_strided_slice %167 {offsets = [0, 0], sizes = [16, 8], strides = [1, 1]} : vector<16x32xbf16> to vector<16x8xbf16>
    %171 = vector.extract_strided_slice %168 {offsets = [0, 0], sizes = [16, 8], strides = [1, 1]} : vector<16x32xbf16> to vector<16x8xbf16>
    %cst_51 = arith.constant dense<0.000000e+00> : vector<16x16xf32>
    %172 = tpu.matmul %170, %171, %cst_51 {dimension_numbers = #tpu.dot_dimension_numbers<[1], [1], [0], [0], [0, 0, 1, 0], [], []>} : vector<16x8xbf16>, vector<16x8xbf16>, vector<16x16xf32> -> vector<16x16xf32>
    %173 = arith.addf %172, %2 : vector<16x16xf32>
    %cst_52 = arith.constant dense<0xFF800000> : vector<16xf32>
    %174 = vector.multi_reduction <maximumf>, %173, %cst_52 [1] : vector<16x16xf32> to vector<16xf32>
    %175 = vector.shape_cast %174 : vector<16xf32> to vector<16x1xf32>
    %176 = vector.broadcast %175 : vector<16x1xf32> to vector<16x16xf32>
    %177 = arith.subf %173, %176 : vector<16x16xf32>
    %178 = math.exp %177 : vector<16x16xf32>
    %cst_53 = arith.constant dense<0.000000e+00> : vector<16xf32>
    %179 = vector.multi_reduction <add>, %178, %cst_53 [1] : vector<16x16xf32> to vector<16xf32>
    %180 = vector.shape_cast %179 : vector<16xf32> to vector<16x1xf32>
    %181 = tpu.reciprocal %180 {approx = true} : vector<16x1xf32> -> vector<16x1xf32>
    %182 = vector.broadcast %181 : vector<16x1xf32> to vector<16x16xf32>
    %183 = arith.mulf %178, %182 : vector<16x16xf32>
    %184 = arith.truncf %183 : vector<16x16xf32> to vector<16x16xbf16>
    %185 = vector.extract_strided_slice %169 {offsets = [0, 0], sizes = [16, 8], strides = [1, 1]} : vector<16x32xbf16> to vector<16x8xbf16>
    %cst_54 = arith.constant dense<0.000000e+00> : vector<16x8xf32>
    %186 = tpu.matmul %184, %185, %cst_54 {dimension_numbers = #tpu.dot_dimension_numbers<[1], [0], [0], [1], [0, 0, 1, 1], [], []>} : vector<16x16xbf16>, vector<16x8xbf16>, vector<16x8xf32> -> vector<16x8xf32>
    %187 = vector.extract_strided_slice %167 {offsets = [0, 8], sizes = [16, 8], strides = [1, 1]} : vector<16x32xbf16> to vector<16x8xbf16>
    %188 = vector.extract_strided_slice %168 {offsets = [0, 8], sizes = [16, 8], strides = [1, 1]} : vector<16x32xbf16> to vector<16x8xbf16>
    %cst_55 = arith.constant dense<0.000000e+00> : vector<16x16xf32>
    %189 = tpu.matmul %187, %188, %cst_55 {dimension_numbers = #tpu.dot_dimension_numbers<[1], [1], [0], [0], [0, 0, 1, 0], [], []>} : vector<16x8xbf16>, vector<16x8xbf16>, vector<16x16xf32> -> vector<16x16xf32>
    %190 = arith.addf %189, %2 : vector<16x16xf32>
    %cst_56 = arith.constant dense<0xFF800000> : vector<16xf32>
    %191 = vector.multi_reduction <maximumf>, %190, %cst_56 [1] : vector<16x16xf32> to vector<16xf32>
    %192 = vector.shape_cast %191 : vector<16xf32> to vector<16x1xf32>
    %193 = vector.broadcast %192 : vector<16x1xf32> to vector<16x16xf32>
    %194 = arith.subf %190, %193 : vector<16x16xf32>
    %195 = math.exp %194 : vector<16x16xf32>
    %cst_57 = arith.constant dense<0.000000e+00> : vector<16xf32>
    %196 = vector.multi_reduction <add>, %195, %cst_57 [1] : vector<16x16xf32> to vector<16xf32>
    %197 = vector.shape_cast %196 : vector<16xf32> to vector<16x1xf32>
    %198 = tpu.reciprocal %197 {approx = true} : vector<16x1xf32> -> vector<16x1xf32>
    %199 = vector.broadcast %198 : vector<16x1xf32> to vector<16x16xf32>
    %200 = arith.mulf %195, %199 : vector<16x16xf32>
    %201 = arith.truncf %200 : vector<16x16xf32> to vector<16x16xbf16>
    %202 = vector.extract_strided_slice %169 {offsets = [0, 8], sizes = [16, 8], strides = [1, 1]} : vector<16x32xbf16> to vector<16x8xbf16>
    %cst_58 = arith.constant dense<0.000000e+00> : vector<16x8xf32>
    %203 = tpu.matmul %201, %202, %cst_58 {dimension_numbers = #tpu.dot_dimension_numbers<[1], [0], [0], [1], [0, 0, 1, 1], [], []>} : vector<16x16xbf16>, vector<16x8xbf16>, vector<16x8xf32> -> vector<16x8xf32>
    %204 = vector.extract_strided_slice %167 {offsets = [0, 16], sizes = [16, 8], strides = [1, 1]} : vector<16x32xbf16> to vector<16x8xbf16>
    %205 = vector.extract_strided_slice %168 {offsets = [0, 16], sizes = [16, 8], strides = [1, 1]} : vector<16x32xbf16> to vector<16x8xbf16>
    %cst_59 = arith.constant dense<0.000000e+00> : vector<16x16xf32>
    %206 = tpu.matmul %204, %205, %cst_59 {dimension_numbers = #tpu.dot_dimension_numbers<[1], [1], [0], [0], [0, 0, 1, 0], [], []>} : vector<16x8xbf16>, vector<16x8xbf16>, vector<16x16xf32> -> vector<16x16xf32>
    %207 = arith.addf %206, %2 : vector<16x16xf32>
    %cst_60 = arith.constant dense<0xFF800000> : vector<16xf32>
    %208 = vector.multi_reduction <maximumf>, %207, %cst_60 [1] : vector<16x16xf32> to vector<16xf32>
    %209 = vector.shape_cast %208 : vector<16xf32> to vector<16x1xf32>
    %210 = vector.broadcast %209 : vector<16x1xf32> to vector<16x16xf32>
    %211 = arith.subf %207, %210 : vector<16x16xf32>
    %212 = math.exp %211 : vector<16x16xf32>
    %cst_61 = arith.constant dense<0.000000e+00> : vector<16xf32>
    %213 = vector.multi_reduction <add>, %212, %cst_61 [1] : vector<16x16xf32> to vector<16xf32>
    %214 = vector.shape_cast %213 : vector<16xf32> to vector<16x1xf32>
    %215 = tpu.reciprocal %214 {approx = true} : vector<16x1xf32> -> vector<16x1xf32>
    %216 = vector.broadcast %215 : vector<16x1xf32> to vector<16x16xf32>
    %217 = arith.mulf %212, %216 : vector<16x16xf32>
    %218 = arith.truncf %217 : vector<16x16xf32> to vector<16x16xbf16>
    %219 = vector.extract_strided_slice %169 {offsets = [0, 16], sizes = [16, 8], strides = [1, 1]} : vector<16x32xbf16> to vector<16x8xbf16>
    %cst_62 = arith.constant dense<0.000000e+00> : vector<16x8xf32>
    %220 = tpu.matmul %218, %219, %cst_62 {dimension_numbers = #tpu.dot_dimension_numbers<[1], [0], [0], [1], [0, 0, 1, 1], [], []>} : vector<16x16xbf16>, vector<16x8xbf16>, vector<16x8xf32> -> vector<16x8xf32>
    %221 = vector.extract_strided_slice %167 {offsets = [0, 24], sizes = [16, 8], strides = [1, 1]} : vector<16x32xbf16> to vector<16x8xbf16>
    %222 = vector.extract_strided_slice %168 {offsets = [0, 24], sizes = [16, 8], strides = [1, 1]} : vector<16x32xbf16> to vector<16x8xbf16>
    %cst_63 = arith.constant dense<0.000000e+00> : vector<16x16xf32>
    %223 = tpu.matmul %221, %222, %cst_63 {dimension_numbers = #tpu.dot_dimension_numbers<[1], [1], [0], [0], [0, 0, 1, 0], [], []>} : vector<16x8xbf16>, vector<16x8xbf16>, vector<16x16xf32> -> vector<16x16xf32>
    %224 = arith.addf %223, %2 : vector<16x16xf32>
    %cst_64 = arith.constant dense<0xFF800000> : vector<16xf32>
    %225 = vector.multi_reduction <maximumf>, %224, %cst_64 [1] : vector<16x16xf32> to vector<16xf32>
    %226 = vector.shape_cast %225 : vector<16xf32> to vector<16x1xf32>
    %227 = vector.broadcast %226 : vector<16x1xf32> to vector<16x16xf32>
    %228 = arith.subf %224, %227 : vector<16x16xf32>
    %229 = math.exp %228 : vector<16x16xf32>
    %cst_65 = arith.constant dense<0.000000e+00> : vector<16xf32>
    %230 = vector.multi_reduction <add>, %229, %cst_65 [1] : vector<16x16xf32> to vector<16xf32>
    %231 = vector.shape_cast %230 : vector<16xf32> to vector<16x1xf32>
    %232 = tpu.reciprocal %231 {approx = true} : vector<16x1xf32> -> vector<16x1xf32>
    %233 = vector.broadcast %232 : vector<16x1xf32> to vector<16x16xf32>
    %234 = arith.mulf %229, %233 : vector<16x16xf32>
    %235 = arith.truncf %234 : vector<16x16xf32> to vector<16x16xbf16>
    %236 = vector.extract_strided_slice %169 {offsets = [0, 24], sizes = [16, 8], strides = [1, 1]} : vector<16x32xbf16> to vector<16x8xbf16>
    %cst_66 = arith.constant dense<0.000000e+00> : vector<16x8xf32>
    %237 = tpu.matmul %235, %236, %cst_66 {dimension_numbers = #tpu.dot_dimension_numbers<[1], [0], [0], [1], [0, 0, 1, 1], [], []>} : vector<16x16xbf16>, vector<16x8xbf16>, vector<16x8xf32> -> vector<16x8xf32>
    %238 = tpu.concatenate %186, %203, %220, %237 in 1 : vector<16x8xf32>, vector<16x8xf32>, vector<16x8xf32>, vector<16x8xf32> -> vector<16x32xf32>
    %239 = arith.truncf %238 : vector<16x32xf32> to vector<16x32xbf16>
    %cst_67 = arith.constant dense<0.000000e+00> : vector<16x32xf32>
    %240 = tpu.matmul %239, %149, %cst_67 {dimension_numbers = #tpu.dot_dimension_numbers<[1], [0], [0], [1], [0, 0, 1, 1], [], []>} : vector<16x32xbf16>, vector<32x32xbf16>, vector<16x32xf32> -> vector<16x32xf32>
    %241 = vector.broadcast %150 : vector<1x32xf32> to vector<16x32xf32>
    %242 = arith.addf %240, %241 : vector<16x32xf32>
    %243 = arith.addf %242, %120 : vector<16x32xf32>
    %244 = vector.extract_strided_slice %4 {offsets = [4, 0], sizes = [1, 32], strides = [1, 1]} : vector<10x32xf32> to vector<1x32xf32>
    %245 = vector.extract_strided_slice %4 {offsets = [5, 0], sizes = [1, 32], strides = [1, 1]} : vector<10x32xf32> to vector<1x32xf32>
    %cst_68 = arith.constant dense<0.000000e+00> : vector<16xf32>
    %246 = vector.multi_reduction <add>, %243, %cst_68 [1] : vector<16x32xf32> to vector<16xf32>
    %247 = vector.shape_cast %246 : vector<16xf32> to vector<16x1xf32>
    %cst_69 = arith.constant 3.200000e+01 : f32
    %248 = vector.broadcast %cst_69 : f32 to vector<16x1xf32>
    %249 = arith.divf %247, %248 : vector<16x1xf32>
    %250 = vector.broadcast %249 : vector<16x1xf32> to vector<16x32xf32>
    %251 = arith.subf %243, %250 : vector<16x32xf32>
    %252 = arith.mulf %251, %251 : vector<16x32xf32>
    %cst_70 = arith.constant dense<0.000000e+00> : vector<16xf32>
    %253 = vector.multi_reduction <add>, %252, %cst_70 [1] : vector<16x32xf32> to vector<16xf32>
    %254 = vector.shape_cast %253 : vector<16xf32> to vector<16x1xf32>
    %cst_71 = arith.constant 3.200000e+01 : f32
    %255 = vector.broadcast %cst_71 : f32 to vector<16x1xf32>
    %256 = arith.divf %254, %255 : vector<16x1xf32>
    %257 = vector.broadcast %249 : vector<16x1xf32> to vector<16x32xf32>
    %258 = arith.subf %243, %257 : vector<16x32xf32>
    %cst_72 = arith.constant 9.99999974E-6 : f32
    %259 = vector.broadcast %cst_72 : f32 to vector<16x1xf32>
    %260 = arith.addf %256, %259 : vector<16x1xf32>
    %261 = math.rsqrt %260 : vector<16x1xf32>
    %262 = vector.broadcast %261 : vector<16x1xf32> to vector<16x32xf32>
    %263 = arith.mulf %258, %262 : vector<16x32xf32>
    %264 = vector.broadcast %244 : vector<1x32xf32> to vector<16x32xf32>
    %265 = arith.mulf %263, %264 : vector<16x32xf32>
    %266 = vector.broadcast %245 : vector<1x32xf32> to vector<16x32xf32>
    %267 = arith.addf %265, %266 : vector<16x32xf32>
    %268 = arith.truncf %267 : vector<16x32xf32> to vector<16x32xbf16>
    %c2 = arith.constant 2 : index
    %c0_73 = arith.constant 0 : index
    %c0_74 = arith.constant 0 : index
    %269 = vector.load %arg5[%c2, %c0_73, %c0_74] : memref<4x32x32xbf16, #tpu.memory_space<vmem>>, vector<1x32x32xbf16>
    %270 = vector.shape_cast %269 : vector<1x32x32xbf16> to vector<32x32xbf16>
    %cst_75 = arith.constant dense<0.000000e+00> : vector<16x32xf32>
    %271 = tpu.matmul %268, %270, %cst_75 {dimension_numbers = #tpu.dot_dimension_numbers<[1], [0], [0], [1], [0, 0, 1, 1], [], []>} : vector<16x32xbf16>, vector<32x32xbf16>, vector<16x32xf32> -> vector<16x32xf32>
    %272 = vector.extract_strided_slice %4 {offsets = [8, 0], sizes = [1, 32], strides = [1, 1]} : vector<10x32xf32> to vector<1x32xf32>
    %273 = vector.broadcast %272 : vector<1x32xf32> to vector<16x32xf32>
    %274 = arith.addf %271, %273 : vector<16x32xf32>
    %cst_76 = arith.constant 0.000000e+00 : f32
    %275 = vector.broadcast %cst_76 : f32 to vector<16x32xf32>
    %276 = arith.maximumf %274, %275 : vector<16x32xf32>
    %277 = arith.truncf %276 : vector<16x32xf32> to vector<16x32xbf16>
    %c3 = arith.constant 3 : index
    %c0_77 = arith.constant 0 : index
    %c0_78 = arith.constant 0 : index
    %278 = vector.load %arg5[%c3, %c0_77, %c0_78] : memref<4x32x32xbf16, #tpu.memory_space<vmem>>, vector<1x32x32xbf16>
    %279 = vector.shape_cast %278 : vector<1x32x32xbf16> to vector<32x32xbf16>
    %cst_79 = arith.constant dense<0.000000e+00> : vector<16x32xf32>
    %280 = tpu.matmul %277, %279, %cst_79 {dimension_numbers = #tpu.dot_dimension_numbers<[1], [0], [0], [1], [0, 0, 1, 1], [], []>} : vector<16x32xbf16>, vector<32x32xbf16>, vector<16x32xf32> -> vector<16x32xf32>
    %281 = vector.extract_strided_slice %4 {offsets = [9, 0], sizes = [1, 32], strides = [1, 1]} : vector<10x32xf32> to vector<1x32xf32>
    %282 = vector.broadcast %281 : vector<1x32xf32> to vector<16x32xf32>
    %283 = arith.addf %280, %282 : vector<16x32xf32>
    %284 = arith.addf %283, %267 : vector<16x32xf32>
    %c0_80 = arith.constant 0 : index
    %c0_81 = arith.constant 0 : index
    %285 = vector.load %arg8[%c0_80, %c0_81] : memref<16x32xf32, #tpu.memory_space<vmem>>, vector<16x32xf32>
    tpu.vector_store %arg8[%c0_80, %c0_81], %284 {strides = array<i32>} : memref<16x32xf32, #tpu.memory_space<vmem>>, vector<16x32xf32>,
    return
  }
  func.func @transform_0(%arg0: i32) -> (i32, i32) {
    %c0_i32 = arith.constant 0 : i32
    %c0_i32_0 = arith.constant 0 : i32
    return %arg0, %c0_i32 : i32, i32
  }
  func.func @transform_1(%arg0: i32) -> (i32, i32) {
    %c0_i32 = arith.constant 0 : i32
    %c0_i32_0 = arith.constant 0 : i32
    return %arg0, %c0_i32 : i32, i32
  }
  func.func @transform_2(%arg0: i32) -> (i32, i32) {
    %c0_i32 = arith.constant 0 : i32
    %c0_i32_0 = arith.constant 0 : i32
    %c0_i32_1 = arith.constant 0 : i32
    return %c0_i32, %c0_i32_0 : i32, i32
  }
  func.func @transform_3(%arg0: i32) -> (i32, i32, i32) {
    %c0_i32 = arith.constant 0 : i32
    %c0_i32_0 = arith.constant 0 : i32
    %c0_i32_1 = arith.constant 0 : i32
    %c0_i32_2 = arith.constant 0 : i32
    return %c0_i32, %c0_i32_0, %c0_i32_1 : i32, i32, i32
  }
  func.func @transform_4(%arg0: i32) -> (i32, i32, i32) {
    %c0_i32 = arith.constant 0 : i32
    %c0_i32_0 = arith.constant 0 : i32
    %c0_i32_1 = arith.constant 0 : i32
    %c0_i32_2 = arith.constant 0 : i32
    return %c0_i32, %c0_i32_0, %c0_i32_1 : i32, i32, i32
  }
  func.func @transform_5(%arg0: i32) -> (i32, i32) {
    %c0_i32 = arith.constant 0 : i32
    %c0_i32_0 = arith.constant 0 : i32
    %c0_i32_1 = arith.constant 0 : i32
    return %c0_i32, %c0_i32_0 : i32, i32
  }
  func.func @transform_6(%arg0: i32) -> (i32, i32) {
    %c0_i32 = arith.constant 0 : i32
    %c0_i32_0 = arith.constant 0 : i32
    %c0_i32_1 = arith.constant 0 : i32
    return %c0_i32, %c0_i32_0 : i32, i32
  }
  func.func @transform_7(%arg0: i32) -> (i32, i32) {
    %c0_i32 = arith.constant 0 : i32
    %c0_i32_0 = arith.constant 0 : i32
    return %arg0, %c0_i32 : i32, i32
  }
}

</mosaic_0001>

<bundles_post_ra>
// kernel: tpu_custom_call.1
= control target key start
LH: loop header
LB: loop body
LE: loop exit
PB: predicated region body
PF: predicated region fallthrough
CT: control target
= control target key end

     0   :  { %12 = vsyncpa [#allocation3], 0  ;;  %s1907_s0 = inlined_call_operand.hbm [shape: f32[16,32], index: 0, kind: input, shape index: {}]   ;;  %s1908_s1 = inlined_call_operand.hbm [shape: f32[16,32], index: 1, kind: input, shape index: {}]   ;;  %s1909_s2 = inlined_call_operand.hbm [shape: f32[16,16], index: 2, kind: input, shape index: {}]   ;;  %s1910_s3 = inlined_call_operand.hbm [shape: bf16[2,32,96], index: 3, kind: input, shape index: {}]   ;;  %s1911_s4 = inlined_call_operand.hbm [shape: bf16[4,32,32], index: 4, kind: input, shape index: {}]   ;;  %s1912_s5 = inlined_call_operand.vmem [shape: f32[2,96], index: 5, kind: input, shape index: {}]   ;;  %s1913_s6 = inlined_call_operand.hbm [shape: f32[10,32], index: 6, kind: input, shape index: {}]   ;;  %s1914_s7 = inlined_call_operand.hbm [shape: f32[16,32], index: 7, kind: output, shape index: {}]  }
   0x1   :  { %13 = vsyncpa [#allocation6], 0 }
   0x2   :  { %14 = vsyncpa [#allocation9], 0 }
   0x3   :  { %15 = vsyncpa [#allocation12], 0 }
   0x4   :  { %16 = vsyncpa [#allocation4], 0  ;;  %s34_s26 = sshll.u32 %s1908_s1, 4  ;;  %s1582_s27 = smov [#allocation5]   ;;  %s35_s26 = int_to_ptr.hbm [resolvable:$true] %s34_s26 }
   0x5   :  { %s36_s28 = sshll.u32 %s1582_s27, 4  ;;  %s60_s8 = sshll.u32 %s1910_s3, 4  ;;  %s37_s28 = int_to_ptr.vmem [resolvable:$true] %s36_s28  ;;  %s61_s8 = int_to_ptr.hbm [resolvable:$true] %s60_s8 }
   0x6   :  { %s1583_s9 = smov 128   ;;  %s1584_s10 = smov 8  }
   0x7   :  { %42 = dma.hbm_to_vmem [thread:$0]  %s35_s26, 256, %s37_s28, [#allocation6], %s1583_s9, %s1583_s9, %s1584_s10  }
   0x8   :  { %s1585_s11 = smov [#allocation8]   ;;  %s1586_s13 = smov 64  }
   0x9   :  { %s62_s12 = sshll.u32 %s1585_s11, 4  ;;  %s1587_s1 = smov 4   ;;  %s63_s12 = int_to_ptr.vmem [resolvable:$true] %s62_s12 }
   0xa   :  { %68 = dma.hbm_to_vmem [thread:$0]  %s61_s8, 512, %s63_s12, [#allocation9], %s1586_s13, %s1586_s13, %s1587_s1  }
   0xb   :  { %s21_s16 = sshll.u32 %s1907_s0, 4  ;;  %s1588_s3 = smov [#allocation2]   ;;  %s22_s16 = int_to_ptr.hbm [resolvable:$true] %s21_s16 }
   0xc   :  { %s23_s17 = sshll.u32 %s1588_s3, 4  ;;  %s47_s20 = sshll.u32 %s1909_s2, 4  ;;  %s24_s17 = int_to_ptr.vmem [resolvable:$true] %s23_s17  ;;  %s48_s20 = int_to_ptr.hbm [resolvable:$true] %s47_s20 }
   0xd   :  { %29 = dma.hbm_to_vmem [thread:$0]  %s22_s16, 256, %s24_s17, [#allocation3], %s1583_s9, %s1583_s9, %s1584_s10  }
   0xe   :  { %s1589_s21 = smov [#allocation7]   ;;  %s73_s25 = sshll.u32 %s1911_s4, 4  ;;  %s74_s25 = int_to_ptr.hbm [resolvable:$true] %s73_s25 }
   0xf   :  { %s49_s22 = sshll.u32 %s1589_s21, 4  ;;  %s88_s2 = sshll.u32 %s1913_s6, 4  ;;  %s50_s22 = int_to_ptr.vmem [resolvable:$true] %s49_s22  ;;  %s89_s2 = int_to_ptr.hbm [resolvable:$true] %s88_s2 }
  0x10   :  { %55 = dma.hbm_to_vmem [thread:$0]  %s48_s20, 256, %s50_s22, [#allocation6], %s1583_s9, %s1583_s9, %s1584_s10  }
  0x11   :  { %s1590_s27 = smov [#allocation10]   ;;  %s1591_s29 = smov [#allocation11]  }
  0x12   :  { %s75_s28 = sshll.u32 %s1590_s27, 4  ;;  %s90_s30 = sshll.u32 %s1591_s29, 4  ;;  %s76_s28 = int_to_ptr.vmem [resolvable:$true] %s75_s28  ;;  %s91_s30 = int_to_ptr.vmem [resolvable:$true] %s90_s30 }
  0x13   :  { %81 = dma.hbm_to_vmem [thread:$0]  %s74_s25, 1024, %s76_s28, [#allocation9], %s1586_s13, %s1586_s13, %s1587_s1  }
  0x14   :  { %96 = dma.hbm_to_vmem [thread:$0]  %s89_s2, 256, %s91_s30, [#allocation12], %s1583_s9, %s1583_s9, %s1584_s10  }
  0x15   :  { %1572 = dma.done.wait [#allocation3], 256  }
  0x16   :  { %1573 = vsyncadd [#allocation3], 4294967040 }
  0x17   :  { %1574 = dma.done.wait [#allocation6], 512  }
  0x18   :  { %1575 = vsyncadd [#allocation6], 4294966784 }
  0x19   :  { %1576 = dma.done.wait [#allocation9], 1536  }
  0x1a   :  { %1577 = vsyncadd [#allocation9], 4294965760 }
  0x1b   :  { %1578 = dma.done.wait [#allocation12], 256  }
  0x1c   :  { %1579 = vsyncadd [#allocation12], 4294967040  ;;  %vm131_vm0 = vcmask 261120   ;;  %v122_v0 = vld [vmem:[#allocation2] sm:$0xff]  ;;  %v123_v2 = vld [vmem:[#allocation2 + $0x8] sm:$0xff]  ;;  %v1592_v4 = vmov 32.0  }
  0x1d   :  { %v132_v1 = vsel %vm131_vm0, %v122_v0, 0.0  ;;  %v135_v3 = vsel %vm131_vm0, %v123_v2, 0.0  ;;  %1325 = vrcp.f32 %v1592_v4  ;;  %v1260_v21 = vld [vmem:[#allocation8 + $0x8] sm:$0xff]  ;;  %v1259_v23 = vld [vmem:[#allocation8] sm:$0xff]  ;;  %v1704_v53 = vld [vmem:[%s1912_s5] sm:$0x3] }
  0x1e   :  { %133 = vadd.xlane.f32.xlu0 %v132_v1  ;;  %220 = vmatpush.bf16.msra.mxu0 %v1260_v21  ;;  %v1690_v40 = vld [vmem:[#allocation11] sm:$0xff]  ;;  %v198_v54 = vperm.slane %v1704_v53, 0  ;;  %s1593_s5 = smov 72   ;;  %s1594_s8 = smov 96   ;;  %vm246_vm8 = vcmask 64512   ;;  %vm267_vm9 = vcmask 130048  }
  0x1f   :  { %v183_v43 = vperm.slane %v1690_v40, 0  ;;  %v186_v48 = vperm.slane %v1690_v40, 1  ;;  %s1595_s11 = smov 120   ;;  %s1596_s12 = smov 88   ;;  %vm540_vm10 = vcmask 195584  }
  0x20   :  { %s1597_s1 = smov 104   ;;  %s1598_s14 = smov 80  }
  0x21   :  { %s1599_s15 = smov 112   ;;  %s1600_s16 = smov 56  }
  0x22   :  { %221 = vmatpush.bf16.msra.mxu0 %v1259_v23  ;;  %v1732_v23 = vld [vmem:[#allocation7 + $0x8] sm:$0xff]  ;;  %s1602_s3 = smov 48   ;;  %s1603_s17 = smov 24  }
  0x23   :  { %v1326_v5 = vpop.eup %1325  ;;  %s1604_s18 = smov 16   ;;  %s1605_s19 = smov [#allocation13]  }
  0x24   :  { %v139_v6 = vmul.f32 32.0, %v1326_v5  ;;  %vm143_vm1 = vweird.f32 %v1326_v5  ;;  %s1170_s20 = sshll.u32 %s1605_s19, 4  ;;  %s1172_s23 = sshll.u32 %s1914_s7, 4  ;;  %s1171_s20 = int_to_ptr.vmem [resolvable:$true] %s1170_s20  ;;  %s1173_s23 = int_to_ptr.hbm [resolvable:$true] %s1172_s23 }
  0x26   :  { %136 = vadd.xlane.f32.xlu0 %v135_v3  ;;  %v140_v7 = vsub.f32 1.0, %v139_v6 }
  0x28   :  { %v141_v8 = vmul.f32 %v1326_v5, %v140_v7 }
  0x2a   :  { %v142_v9 = vadd.f32 %v1326_v5, %v141_v8 }
  0x2c   :  { %v1682_v10 = vsel %vm143_vm1, %v1326_v5, %v142_v9 }
  0x91   :  { %v134_v11 = vpop.xlane.xlu0 %133 }
  0x92   :  { %v145_v12 = vmul.f32 %v1682_v10, %v134_v11 }
  0x94   :  { %v147_v13 = vsub.f32 %v122_v0, %v145_v12 }
  0x96   :  { %v149_v14 = vmul.f32 %v147_v13, %v147_v13 }
  0x98   :  { %v151_v15 = vsel %vm131_vm0, %v149_v14, 0.0 }
  0x99   :  { %152 = vadd.xlane.f32.xlu1 %v151_v15  ;;  %v137_v16 = vpop.xlane.xlu0 %136 }
  0x9a   :  { %v146_v17 = vmul.f32 %v1682_v10, %v137_v16 }
  0x9c   :  { %v148_v18 = vsub.f32 %v123_v2, %v146_v17 }
  0x9e   :  { %v150_v19 = vmul.f32 %v148_v18, %v148_v18 }
  0xa0   :  { %v154_v20 = vsel %vm131_vm0, %v150_v19, 0.0  ;;  %v1728_v19 = vld [vmem:[#allocation7] sm:$0xff] }
  0xa1   :  { %155 = vadd.xlane.f32.xlu1 %v154_v20 }
 0x10c   :  { %v153_v22 = vpop.xlane.xlu1 %152 }
 0x10d   :  { %v157_v24 = vmul.f32 %v153_v22, %v1682_v10 }
 0x10f   :  { %v159_v25 = vadd.f32 1e-05, %v157_v24 }
 0x111   :  { %1327 = vrsqrt.f32 %v159_v25  ;;  %vm167_vm3 = vweird.f32 %v159_v25 }
 0x114   :  { %v156_v26 = vpop.xlane.xlu1 %155 }
 0x115   :  { %v158_v27 = vmul.f32 %v156_v26, %v1682_v10 }
 0x117   :  { %v1328_v28 = vpop.eup %1327  ;;  %v160_v29 = vadd.f32 1e-05, %v158_v27 }
 0x118   :  { %v162_v30 = vmul.f32 %v1328_v28, %v159_v25  ;;  %vm168_vm2 = vweird.f32 %v1328_v28 }
 0x119   :  { %1329 = vrsqrt.f32 %v160_v29  ;;  %vm169_vm4 = vmor %vm167_vm3, %vm168_vm2  ;;  %vm177_vm6 = vweird.f32 %v160_v29 }
 0x11a   :  { %v163_v31 = vmul.f32 %v1328_v28, %v162_v30 }
 0x11c   :  { %v164_v32 = vmul.f32 0.5, %v163_v31 }
 0x11e   :  { %v165_v33 = vsub.f32 1.5, %v164_v32 }
 0x11f   :  { %v1330_v34 = vpop.eup %1329 }
 0x120   :  { %v166_v35 = vmul.f32 %v1328_v28, %v165_v33  ;;  %v172_v36 = vmul.f32 %v1330_v34, %v160_v29  ;;  %vm178_vm5 = vweird.f32 %v1330_v34 }
 0x121   :  { %vm179_vm7 = vmor %vm177_vm6, %vm178_vm5 }
 0x122   :  { %v173_v37 = vmul.f32 %v1330_v34, %v172_v36  ;;  %v170_v38 = vsel %vm169_vm4, %v1328_v28, %v166_v35 }
 0x123   :  { %v181_v42 = vmul.f32 %v170_v38, %v147_v13 }
 0x124   :  { %v174_v39 = vmul.f32 0.5, %v173_v37 }
 0x125   :  { %v184_v47 = vmul.f32 %v183_v43, %v181_v42 }
 0x126   :  { %v175_v41 = vsub.f32 1.5, %v174_v39 }
 0x127   :  { %v1694_v50 = vadd.f32 %v186_v48, %v184_v47 }
 0x128   :  { %v176_v44 = vmul.f32 %v1330_v34, %v175_v41 }
 0x12a   :  { %v180_v45 = vsel %vm179_vm7, %v1330_v34, %v176_v44 }
 0x12b   :  { %v182_v46 = vmul.f32 %v180_v45, %v148_v18 }
 0x12d   :  { %v185_v49 = vmul.f32 %v183_v43, %v182_v46 }
 0x12f   :  { %v1696_v51 = vadd.f32 %v186_v48, %v185_v49 }
 0x131   :  { %v197_v52 = vpack.c.bf16 %v1696_v51, %v1694_v50 }
 0x133   :  { %1196 = vmatmul.msk.bf16.vlgmr.msra.gmra.mxu0 %vm131_vm0, %v197_v52 }
 0x1b0   :  { %v223_v55 = vpop.f32.mrf.mxu0 }
 0x1b1   :  { %v224_v56 = vadd.f32 %v223_v55, %v198_v54 }
 0x1b3   :  { %v228_v57 = vmul.f32 0.35355338, %v224_v56  ;;  %v232_v59 = vpack.c.bf16 %v224_v56, %v224_v56 }
 0x1b5   :  { %v230_v61 = vpack.c.bf16 %v228_v57, %v228_v57  ;;  %v241_v0 = vunpack.c.l.b16 %v232_v59 }
 0x1b7   :  { %v236_v3 = vunpack.c.l.b16 %v230_v61 }
 0x1b8   :  { %v225_v58 = vpop.f32.mrf.mxu0 }
 0x1b9   :  { %v226_v60 = vadd.f32 %v225_v58, %v198_v54 }
 0x1bb   :  { %v229_v62 = vmul.f32 0.35355338, %v226_v60  ;;  %v233_v63 = vpack.c.bf16 %v226_v60, %v226_v60 }
 0x1bd   :  { %v231_v1 = vpack.c.bf16 %v229_v62, %v229_v62  ;;  %v242_v2 = vunpack.c.l.b16 %v233_v63 }
 0x1bf   :  { %v237_v4 = vunpack.c.l.b16 %v231_v1  ;;  %v1707_v5 = vpack.c.b16 %v242_v2, %v241_v0 }
 0x1c1   :  { %v238_v6 = vpack.c.b16 %v237_v4, %v236_v3  ;;  %447 = vrot.lane.b32.xlu1 %v1707_v5, %s1593_s5  ;;  %244 = vrot.lane.b32.xlu2 %v1707_v5, %s1594_s8 }
 0x1c3   :  { %311 = vrot.lane.b32.xlu0 %v238_v6, %s1595_s11 }
 0x1c9   :  { %313 = vrot.lane.b32.xlu2 %v1707_v5, %s1596_s12 }
 0x1d1   :  { %445 = vrot.lane.b32.xlu2 %v238_v6, %s1597_s1 }
 0x1d9   :  { %380 = vrot.lane.b32.xlu2 %v1707_v5, %s1598_s14 }
 0x1e1   :  { %378 = vrot.lane.b32.xlu2 %v238_v6, %s1599_s15 }
 0x21b   :  { %v245_v7 = vpop.permute.xlu2 %244 }
 0x21c   :  { %v251_v8 = vsel %vm246_vm8, %v245_v7, 0 }
 0x21d   :  { %260 = vmatpush.bf16.xpose.msra.mxu1 %v251_v8 }
 0x223   :  { %v314_v9 = vpop.permute.xlu2 %313 }
 0x224   :  { %1197 = vmatmul.msk.bf16.vlgmr.msra.gmra.mxu1 %vm246_vm8, %v238_v6  ;;  %v319_v11 = vsel %vm246_vm8, %v314_v9, 0 }
 0x225   :  { %328 = vmatpush.bf16.xpose.msra.mxu3 %v319_v11 }
 0x22b   :  { %v446_v12 = vpop.permute.xlu2 %445 }
 0x233   :  { %v448_v13 = vpop.permute.xlu1 %447  ;;  %v381_v14 = vpop.permute.xlu2 %380 }
 0x234   :  { %v386_v15 = vsel %vm246_vm8, %v381_v14, 0  ;;  %v453_v16 = vsel %vm246_vm8, %v448_v13, 0 }
 0x235   :  { %395 = vmatpush.bf16.xpose.msrb.mxu0 %v386_v15  ;;  %462 = vmatpush.bf16.xpose.msrb.mxu3 %v453_v16  ;;  %v312_v17 = vpop.permute.xlu0 %311 }
 0x236   :  { %1199 = vmatmul.msk.bf16.vlgmr.msra.gmra.mxu3 %vm246_vm8, %v312_v17 }
 0x23b   :  { %v379_v18 = vpop.permute.xlu2 %378 }
 0x23c   :  { %1201 = vmatmul.msk.bf16.vlgmr.msrb.gmra.mxu0 %vm246_vm8, %v379_v18 }
 0x246   :  { %1203 = vmatmul.msk.bf16.vlgmr.msrb.gmra.mxu3 %vm246_vm8, %v446_v12 }
 0x2a1   :  { %v262_v20 = vpop.f32.mrf.mxu1 }
 0x2a2   :  { %v263_v21 = vadd.f32 %v262_v20, %v1728_v19 }
 0x2a4   :  { %v268_v22 = vsel %vm267_vm9, %v263_v21, -inf }
 0x2a5   :  { %269 = vmax.xlane.f32.xlu0 %v268_v22 }
 0x2a9   :  { %v264_v24 = vpop.f32.mrf.mxu1 }
 0x2aa   :  { %v265_v25 = vadd.f32 %v264_v24, %v1732_v23 }
 0x2ac   :  { %v271_v26 = vsel %vm267_vm9, %v265_v25, -inf }
 0x2ad   :  { %272 = vmax.xlane.f32.xlu2 %v271_v26 }
 0x2b9   :  { %v330_v27 = vpop.f32.mrf.mxu3  ;;  %v397_v28 = vpop.f32.mrf.mxu0 }
 0x2ba   :  { %v331_v29 = vadd.f32 %v330_v27, %v1728_v19  ;;  %v398_v30 = vadd.f32 %v397_v28, %v1728_v19 }
 0x2bc   :  { %v335_v31 = vsel %vm267_vm9, %v331_v29, -inf  ;;  %v402_v32 = vsel %vm267_vm9, %v398_v30, -inf }
 0x2bd   :  { %336 = vmax.xlane.f32.xlu1 %v335_v31  ;;  %403 = vmax.xlane.f32.xlu0 %v402_v32 }
 0x2c1   :  { %v332_v33 = vpop.f32.mrf.mxu3  ;;  %v399_v34 = vpop.f32.mrf.mxu0 }
 0x2c2   :  { %v333_v35 = vadd.f32 %v332_v33, %v1732_v23  ;;  %v400_v36 = vadd.f32 %v399_v34, %v1732_v23 }
 0x2c4   :  { %v405_v37 = vsel %vm267_vm9, %v400_v36, -inf  ;;  %v338_v38 = vsel %vm267_vm9, %v333_v35, -inf }
 0x2c5   :  { %406 = vmax.xlane.f32.xlu2 %v405_v37  ;;  %339 = vmax.xlane.f32.xlu0 %v338_v38 }
 0x2c9   :  { %v464_v39 = vpop.f32.mrf.mxu3 }
 0x2ca   :  { %v465_v41 = vadd.f32 %v464_v39, %v1728_v19 }
 0x2cc   :  { %v469_v42 = vsel %vm267_vm9, %v465_v41, -inf }
 0x2cd   :  { %470 = vmax.xlane.f32.xlu2 %v469_v42 }
 0x2d1   :  { %v466_v43 = vpop.f32.mrf.mxu3 }
 0x2d2   :  { %v467_v44 = vadd.f32 %v466_v43, %v1732_v23 }
 0x2d4   :  { %v472_v45 = vsel %vm267_vm9, %v467_v44, -inf }
 0x2d5   :  { %473 = vmax.xlane.f32.xlu1 %v472_v45 }
 0x2e5   :  { %291 = vrot.lane.b32.xlu2 %v1707_v5, %s1586_s13  ;;  %s1601_s13 = smov 40  }
 0x2ee   :  { %358 = vrot.lane.b32.xlu1 %v1707_v5, %s1600_s16 }
 0x318   :  { %v270_v46 = vpop.xlane.xlu0 %269 }
 0x319   :  { %v274_v47 = vsub.f32 %v263_v21, %v270_v46 }
 0x31b   :  { %v276_v48 = vmul.f32 1.442695, %v274_v47 }
 0x31d   :  { %1331 = vpow2.f32 %v276_v48 }
 0x320   :  { %v273_v49 = vpop.xlane.xlu2 %272 }
 0x321   :  { %v275_v52 = vsub.f32 %v265_v25, %v273_v49 }
 0x323   :  { %v1751_v54 = vpop.eup %1331  ;;  %v278_v55 = vmul.f32 1.442695, %v275_v52 }
 0x324   :  { %v280_v56 = vsel %vm267_vm9, %v1751_v54, 0.0 }
 0x325   :  { %1333 = vpow2.f32 %v278_v55  ;;  %281 = vadd.xlane.f32.xlu1 %v280_v56 }
 0x32b   :  { %v1334_v57 = vpop.eup %1333 }
 0x32c   :  { %v283_v58 = vsel %vm267_vm9, %v1334_v57, 0.0 }
 0x32d   :  { %284 = vadd.xlane.f32.xlu0 %v283_v58 }
 0x330   :  { %v337_v59 = vpop.xlane.xlu1 %336  ;;  %v404_v60 = vpop.xlane.xlu0 %403 }
 0x331   :  { %v341_v61 = vsub.f32 %v331_v29, %v337_v59  ;;  %v408_v62 = vsub.f32 %v398_v30, %v404_v60 }
 0x333   :  { %v343_v63 = vmul.f32 1.442695, %v341_v61  ;;  %v410_v0 = vmul.f32 1.442695, %v408_v62 }
 0x335   :  { %1335 = vpow2.f32 %v343_v63 }
 0x336   :  { %1337 = vpow2.f32 %v410_v0 }
 0x338   :  { %v407_v1 = vpop.xlane.xlu2 %406  ;;  %v340_v2 = vpop.xlane.xlu0 %339 }
 0x339   :  { %v409_v3 = vsub.f32 %v400_v36, %v407_v1  ;;  %v342_v7 = vsub.f32 %v333_v35, %v340_v2 }
 0x33b   :  { %v1336_v4 = vpop.eup %1335  ;;  %v412_v6 = vmul.f32 1.442695, %v409_v3  ;;  %v345_v12 = vmul.f32 1.442695, %v342_v7 }
 0x33c   :  { %v1756_v8 = vpop.eup %1337  ;;  %v347_v9 = vsel %vm267_vm9, %v1336_v4, 0.0 }
 0x33d   :  { %1339 = vpow2.f32 %v412_v6  ;;  %348 = vadd.xlane.f32.xlu1 %v347_v9  ;;  %v414_v11 = vsel %vm267_vm9, %v1756_v8, 0.0 }
 0x33e   :  { %415 = vadd.xlane.f32.xlu2 %v414_v11  ;;  %1341 = vpow2.f32 %v345_v12 }
 0x340   :  { %v471_v13 = vpop.xlane.xlu2 %470 }
 0x341   :  { %v475_v15 = vsub.f32 %v465_v41, %v471_v13  ;;  %v125_v13 = vld [vmem:[#allocation5 + $0x8] sm:$0xff] }
 0x343   :  { %v1761_v14 = vpop.eup %1339  ;;  %v477_v17 = vmul.f32 1.442695, %v475_v15  ;;  %v124_v15 = vld [vmem:[#allocation5] sm:$0xff] }
 0x344   :  { %v417_v16 = vsel %vm267_vm9, %v1761_v14, 0.0  ;;  %v1342_v21 = vpop.eup %1341 }
 0x345   :  { %418 = vadd.xlane.f32.xlu0 %v417_v16  ;;  %1343 = vpow2.f32 %v477_v17  ;;  %v350_v24 = vsel %vm267_vm9, %v1342_v21, 0.0  ;;  %v576_v16 = vsel %vm131_vm0, %v124_v15, 0.0  ;;  %v1262_v17 = vld [vmem:[#allocation10 + $0x8] sm:$0xff] }
 0x346   :  { %566 = vmatpush.bf16.msra.mxu0 %v1262_v17 }
 0x348   :  { %v474_v18 = vpop.xlane.xlu1 %473  ;;  %v292_v20 = vpop.permute.xlu2 %291 }
 0x349   :  { %304 = vmatpush.bf16.msra.mxu2 %v292_v20  ;;  %v476_v22 = vsub.f32 %v467_v44, %v474_v18  ;;  %v1261_v18 = vld [vmem:[#allocation10] sm:$0xff] }
 0x34a   :  { %567 = vmatpush.bf16.msra.mxu0 %v1261_v18 }
 0x34b   :  { %v479_v25 = vmul.f32 1.442695, %v476_v22  ;;  %v1344_v26 = vpop.eup %1343 }
 0x34c   :  { %v481_v27 = vsel %vm267_vm9, %v1344_v26, 0.0 }
 0x34d   :  { %351 = vadd.xlane.f32.xlu0 %v350_v24  ;;  %1345 = vpow2.f32 %v479_v25 }
 0x353   :  { %v1346_v28 = vpop.eup %1345 }
 0x354   :  { %v484_v29 = vsel %vm267_vm9, %v1346_v28, 0.0 }
 0x355   :  { %482 = vadd.xlane.f32.xlu0 %v481_v27 }
 0x356   :  { %492 = vrot.lane.b32.xlu1 %v1707_v5, %s1601_s13 }
 0x35d   :  { %485 = vadd.xlane.f32.xlu0 %v484_v29 }
 0x360   :  { %v359_v30 = vpop.permute.xlu1 %358 }
 0x361   :  { %371 = vmatpush.bf16.msrb.mxu2 %v359_v30 }
 0x371   :  { %425 = vrot.lane.b32.xlu0 %v1707_v5, %s1602_s3 }
 0x398   :  { %v282_v31 = vpop.xlane.xlu1 %281 }
 0x399   :  { %1347 = vrcp.f32 %v282_v31 }
 0x39f   :  { %v1348_v33 = vpop.eup %1347 }
 0x3a0   :  { %v285_v32 = vpop.xlane.xlu0 %284  ;;  %v288_v35 = vmul.f32 %v1348_v33, %v1751_v54 }
 0x3a1   :  { %1349 = vrcp.f32 %v285_v32 }
 0x3a7   :  { %v1350_v34 = vpop.eup %1349 }
 0x3a8   :  { %v289_v36 = vmul.f32 %v1350_v34, %v1334_v57 }
 0x3aa   :  { %v290_v37 = vpack.c.bf16 %v289_v36, %v288_v35 }
 0x3ac   :  { %1198 = vmatmul.msk.bf16.vlgmr.msra.gmra.mxu2 %vm267_vm9, %v290_v37  ;;  %v1263_v37 = vld [vmem:[#allocation8 + $0x10] sm:$0xff] }
 0x3b0   :  { %v349_v39 = vpop.xlane.xlu1 %348 }
 0x3b1   :  { %1351 = vrcp.f32 %v349_v39  ;;  %v416_v54 = vpop.xlane.xlu2 %415 }
 0x3b7   :  { %v1352_v42 = vpop.eup %1351 }
 0x3b8   :  { %v419_v38 = vpop.xlane.xlu0 %418  ;;  %v355_v5 = vmul.f32 %v1352_v42, %v1336_v4 }
 0x3c0   :  { %v352_v41 = vpop.xlane.xlu0 %351 }
 0x3c1   :  { %1353 = vrcp.f32 %v352_v41 }
 0x3c7   :  { %v1354_v43 = vpop.eup %1353 }
 0x3c8   :  { %v356_v44 = vmul.f32 %v1354_v43, %v1342_v21  ;;  %v493_v45 = vpop.permute.xlu1 %492  ;;  %v483_v46 = vpop.xlane.xlu0 %482 }
 0x3c9   :  { %505 = vmatpush.bf16.msra.mxu2 %v493_v45  ;;  %1355 = vrcp.f32 %v483_v46 }
 0x3ca   :  { %v357_v47 = vpack.c.bf16 %v356_v44, %v355_v5 }
 0x3cc   :  { %1200 = vmatmul.msk.bf16.vlgmr.msrb.gmra.mxu2 %vm267_vm9, %v357_v47 }
 0x3cf   :  { %v1356_v49 = vpop.eup %1355 }
 0x3d0   :  { %v486_v48 = vpop.xlane.xlu0 %485  ;;  %v489_v55 = vmul.f32 %v1356_v49, %v1344_v26 }
 0x3d1   :  { %1357 = vrcp.f32 %v486_v48 }
 0x3d2   :  { %1359 = vrcp.f32 %v419_v38  ;;  %v1264_v38 = vld [vmem:[#allocation8 + $0x18] sm:$0xff] }
 0x3d3   :  { %1361 = vrcp.f32 %v416_v54 }
 0x3d7   :  { %v1358_v52 = vpop.eup %1357 }
 0x3d8   :  { %v490_v56 = vmul.f32 %v1358_v52, %v1346_v28  ;;  %v1360_v58 = vpop.eup %1359  ;;  %v544_v52 = vperm.slane %v1690_v40, 6 }
 0x3d9   :  { %v1362_v59 = vpop.eup %1361  ;;  %v423_v60 = vmul.f32 %v1360_v58, %v1761_v14  ;;  %v579_v14 = vsel %vm131_vm0, %v125_v13, 0.0 }
 0x3da   :  { %v491_v57 = vpack.c.bf16 %v490_v56, %v489_v55  ;;  %v422_v61 = vmul.f32 %v1362_v59, %v1756_v8 }
 0x3dc   :  { %1204 = vmatmul.msk.bf16.vlgmr.msra.gmra.mxu2 %vm267_vm9, %v491_v57  ;;  %v424_v63 = vpack.c.bf16 %v423_v60, %v422_v61 }
 0x3e3   :  { %v426_v62 = vpop.permute.xlu0 %425 }
 0x3e4   :  { %438 = vmatpush.bf16.msrb.mxu1 %v426_v62 }
 0x3e7   :  { %1202 = vmatmul.msk.bf16.vlgmr.msrb.gmra.mxu1 %vm267_vm9, %v424_v63  ;;  %v637_v63 = vperm.slane %v1704_v53, 1 }
 0x3e8   :  { %659 = vmatpush.bf16.msra.mxu1 %v1264_v38 }
 0x3ec   :  { %660 = vmatpush.bf16.msra.mxu1 %v1263_v37 }
 0x42f   :  { %v306_v0 = vpop.f32.mrf.mxu2 }
 0x437   :  { %v308_v1 = vpop.f32.mrf.mxu2 }
 0x44f   :  { %v373_v2 = vpop.f32.mrf.mxu2 }
 0x457   :  { %v375_v3 = vpop.f32.mrf.mxu2 }
 0x458   :  { %v1295_v4 = vpack.i.bf16 %v375_v3, %v373_v2 }
 0x45a   :  { %1296 = vrot.lane.b32.xlu1 %v1295_v4, %s1584_s10 }
 0x45f   :  { %v507_v6 = vpop.f32.mrf.mxu2 }
 0x464   :  { %v440_v7 = vpop.f32.mrf.mxu1 }
 0x467   :  { %v509_v9 = vpop.f32.mrf.mxu2 }
 0x468   :  { %v1305_v11 = vpack.i.bf16 %v509_v9, %v507_v6 }
 0x46a   :  { %1306 = vrot.lane.b32.xlu0 %v1305_v11, %s1603_s17 }
 0x46c   :  { %v442_v8 = vpop.f32.mrf.mxu1 }
 0x46d   :  { %v1300_v12 = vpack.i.bf16 %v442_v8, %v440_v7 }
 0x46f   :  { %1301 = vrot.lane.b32.xlu1 %v1300_v12, %s1604_s18 }
 0x494   :  { %580 = vadd.xlane.f32.xlu0 %v579_v14 }
 0x499   :  { %577 = vadd.xlane.f32.xlu1 %v576_v16  ;;  %v620_v16 = vperm.slane %v1690_v40, 2 }
 0x4b2   :  { %668 = vrot.lane.b32.xlu1 %v1263_v37, %s1594_s8 }
 0x4cc   :  { %v1297_v20 = vpop.permute.xlu1 %1296 }
 0x4cd   :  { %v1299_v21 = vunpack.i.h.bf16 %v1297_v20  ;;  %v1298_v22 = vunpack.i.l.bf16 %v1297_v20 }
 0x4cf   :  { %v537_v28 = vsel %vm246_vm8, %v308_v1, %v1299_v21  ;;  %v536_v29 = vsel %vm246_vm8, %v306_v0, %v1298_v22  ;;  %v623_v21 = vperm.slane %v1690_v40, 3 }
 0x4dc   :  { %v1307_v24 = vpop.permute.xlu0 %1306 }
 0x4dd   :  { %v1309_v30 = vunpack.i.h.bf16 %v1307_v24  ;;  %v1308_v31 = vunpack.i.l.bf16 %v1307_v24 }
 0x4e1   :  { %v1302_v25 = vpop.permute.xlu1 %1301 }
 0x4e2   :  { %v1304_v26 = vunpack.i.h.bf16 %v1302_v25  ;;  %v1303_v27 = vunpack.i.l.bf16 %v1302_v25 }
 0x4e4   :  { %v539_v32 = vsel %vm267_vm9, %v537_v28, %v1304_v26  ;;  %v538_v33 = vsel %vm267_vm9, %v536_v29, %v1303_v27 }
 0x4e5   :  { %v541_v34 = vsel %vm540_vm10, %v538_v33, %v1308_v31  ;;  %v542_v35 = vsel %vm540_vm10, %v539_v32, %v1309_v30 }
 0x4e6   :  { %v543_v36 = vpack.c.bf16 %v542_v35, %v541_v34 }
 0x4e8   :  { %1213 = vmatmul.msk.bf16.vlgmr.msra.gmra.mxu0 %vm131_vm0, %v543_v36 }
 0x507   :  { %v581_v39 = vpop.xlane.xlu0 %580 }
 0x508   :  { %v583_v43 = vmul.f32 %v581_v39, %v1682_v10 }
 0x50a   :  { %v585_v45 = vsub.f32 %v125_v13, %v583_v43 }
 0x50c   :  { %v578_v41 = vpop.xlane.xlu1 %577  ;;  %v587_v47 = vmul.f32 %v585_v45, %v585_v45 }
 0x50d   :  { %v582_v42 = vmul.f32 %v578_v41, %v1682_v10 }
 0x50e   :  { %v591_v48 = vsel %vm131_vm0, %v587_v47, 0.0 }
 0x50f   :  { %v584_v5 = vsub.f32 %v124_v15, %v582_v42 }
 0x511   :  { %v586_v44 = vmul.f32 %v584_v5, %v584_v5 }
 0x513   :  { %v588_v46 = vsel %vm131_vm0, %v586_v44, 0.0 }
 0x514   :  { %589 = vadd.xlane.f32.xlu2 %v588_v46 }
 0x51c   :  { %592 = vadd.xlane.f32.xlu2 %v591_v48 }
 0x524   :  { %v669_v9 = vpop.permute.xlu1 %668 }
 0x534   :  { %670 = vrot.lane.b32.xlu2 %v1264_v38, %s1594_s8 }
 0x53c   :  { %675 = vrot.lane.b32.xlu2 %v637_v63, %s1594_s8 }
 0x565   :  { %v569_v49 = vpop.f32.mrf.mxu0 }
 0x566   :  { %v570_v54 = vadd.f32 %v569_v49, %v544_v52 }
 0x568   :  { %v1797_v57 = vadd.f32 %v570_v54, %v1694_v50 }
 0x56d   :  { %v571_v55 = vpop.f32.mrf.mxu0 }
 0x56e   :  { %v572_v56 = vadd.f32 %v571_v55, %v544_v52 }
 0x570   :  { %v1800_v58 = vadd.f32 %v572_v56, %v1696_v51 }
 0x572   :  { %v636_v59 = vpack.c.bf16 %v1800_v58, %v1797_v57 }
 0x574   :  { %1222 = vmatmul.msk.bf16.vlgmr.msra.gmra.mxu1 %vm131_vm0, %v636_v59 }
 0x587   :  { %v590_v60 = vpop.xlane.xlu2 %589 }
 0x588   :  { %v594_v61 = vmul.f32 %v590_v60, %v1682_v10 }
 0x58a   :  { %v596_v62 = vadd.f32 1e-05, %v594_v61 }
 0x58c   :  { %1363 = vrsqrt.f32 %v596_v62  ;;  %vm604_vm12 = vweird.f32 %v596_v62 }
 0x58f   :  { %v593_v0 = vpop.xlane.xlu2 %592 }
 0x590   :  { %v595_v1 = vmul.f32 %v593_v0, %v1682_v10 }
 0x592   :  { %v1364_v50 = vpop.eup %1363  ;;  %v597_v51 = vadd.f32 1e-05, %v595_v1 }
 0x593   :  { %v599_v2 = vmul.f32 %v1364_v50, %v596_v62  ;;  %vm605_vm11 = vweird.f32 %v1364_v50 }
 0x594   :  { %1365 = vrsqrt.f32 %v597_v51  ;;  %vm606_vm13 = vmor %vm604_vm12, %vm605_vm11  ;;  %vm614_vm15 = vweird.f32 %v597_v51 }
 0x595   :  { %v600_v3 = vmul.f32 %v1364_v50, %v599_v2 }
 0x597   :  { %v601_v4 = vmul.f32 0.5, %v600_v3  ;;  %v671_v6 = vpop.permute.xlu2 %670 }
 0x598   :  { %687 = vmatpush.bf16.msra.mxu3 %v671_v6 }
 0x599   :  { %v602_v7 = vsub.f32 1.5, %v601_v4 }
 0x59a   :  { %v1366_v11 = vpop.eup %1365 }
 0x59b   :  { %v603_v8 = vmul.f32 %v1364_v50, %v602_v7  ;;  %v609_v12 = vmul.f32 %v1366_v11, %v597_v51  ;;  %vm615_vm14 = vweird.f32 %v1366_v11 }
 0x59c   :  { %688 = vmatpush.bf16.msra.mxu3 %v669_v9  ;;  %vm616_vm1 = vmor %vm614_vm15, %vm615_vm14 }
 0x59d   :  { %v610_v53 = vmul.f32 %v1366_v11, %v609_v12  ;;  %v607_v13 = vsel %vm606_vm13, %v1364_v50, %v603_v8 }
 0x59e   :  { %v618_v17 = vmul.f32 %v607_v13, %v584_v5 }
 0x59f   :  { %v611_v14 = vmul.f32 0.5, %v610_v53  ;;  %v676_v41 = vpop.permute.xlu2 %675 }
 0x5a0   :  { %v621_v22 = vmul.f32 %v620_v16, %v618_v17 }
 0x5a1   :  { %v612_v15 = vsub.f32 1.5, %v611_v14 }
 0x5a2   :  { %v624_v26 = vadd.f32 %v623_v21, %v621_v22 }
 0x5a3   :  { %v613_v18 = vmul.f32 %v1366_v11, %v612_v15 }
 0x5a5   :  { %v617_v20 = vsel %vm616_vm1, %v1366_v11, %v613_v18 }
 0x5a6   :  { %v619_v24 = vmul.f32 %v617_v20, %v585_v45 }
 0x5a8   :  { %v622_v25 = vmul.f32 %v620_v16, %v619_v24 }
 0x5aa   :  { %v625_v27 = vadd.f32 %v623_v21, %v622_v25 }
 0x5ac   :  { %v667_v28 = vpack.c.bf16 %v625_v27, %v624_v26 }
 0x5ae   :  { %1223 = vmatmul.msk.bf16.vlgmr.msra.gmra.mxu3 %vm131_vm0, %v667_v28 }
 0x5f1   :  { %v662_v29 = vpop.f32.mrf.mxu1 }
 0x5f2   :  { %v663_v30 = vadd.f32 %v662_v29, %v637_v63 }
 0x5f4   :  { %v695_v31 = vmul.f32 0.35355338, %v663_v30 }
 0x5f6   :  { %v697_v34 = vpack.c.bf16 %v695_v31, %v695_v31 }
 0x5f8   :  { %v703_v37 = vunpack.c.l.b16 %v697_v34 }
 0x5f9   :  { %v664_v32 = vpop.f32.mrf.mxu1 }
 0x5fa   :  { %v665_v33 = vadd.f32 %v664_v32, %v637_v63 }
 0x5fc   :  { %v696_v35 = vmul.f32 0.35355338, %v665_v33 }
 0x5fe   :  { %v698_v36 = vpack.c.bf16 %v696_v35, %v696_v35 }
 0x600   :  { %v704_v38 = vunpack.c.l.b16 %v698_v36 }
 0x602   :  { %v705_v39 = vpack.c.b16 %v704_v38, %v703_v37 }
 0x604   :  { %774 = vrot.lane.b32.xlu2 %v705_v39, %s1595_s11 }
 0x631   :  { %v690_v40 = vpop.f32.mrf.mxu3 }
 0x632   :  { %v691_v42 = vadd.f32 %v690_v40, %v676_v41 }
 0x634   :  { %v699_v5 = vpack.c.bf16 %v691_v42, %v691_v42 }
 0x636   :  { %v708_v46 = vunpack.c.l.b16 %v699_v5 }
 0x639   :  { %v692_v43 = vpop.f32.mrf.mxu3 }
 0x63a   :  { %v693_v44 = vadd.f32 %v692_v43, %v676_v41 }
 0x63c   :  { %v700_v45 = vpack.c.bf16 %v693_v44, %v693_v44 }
 0x63e   :  { %v709_v47 = vunpack.c.l.b16 %v700_v45 }
 0x640   :  { %v1813_v48 = vpack.c.b16 %v709_v47, %v708_v46 }
 0x642   :  { %910 = vrot.lane.b32.xlu1 %v1813_v48, %s1597_s1  ;;  %776 = vrot.lane.b32.xlu0 %v1813_v48, %s1595_s11  ;;  %v715_v49 = vsel %vm246_vm8, %v1813_v48, 0 }
 0x643   :  { %843 = vrot.lane.b32.xlu2 %v1813_v48, %s1599_s15  ;;  %724 = vmatpush.bf16.xpose.msrb.mxu2 %v715_v49 }
 0x64a   :  { %841 = vrot.lane.b32.xlu0 %v705_v39, %s1599_s15  ;;  %1224 = vmatmul.msk.bf16.vlgmr.msrb.gmra.mxu2 %vm246_vm8, %v705_v39 }
 0x64b   :  { %908 = vrot.lane.b32.xlu2 %v705_v39, %s1597_s1 }
 0x65e   :  { %v775_v52 = vpop.permute.xlu2 %774 }
 0x69d   :  { %v844_v54 = vpop.permute.xlu2 %843 }
 0x69e   :  { %v849_v55 = vsel %vm246_vm8, %v844_v54, 0 }
 0x69f   :  { %858 = vmatpush.bf16.xpose.msra.mxu2 %v849_v55 }
 0x6a5   :  { %v909_v63 = vpop.permute.xlu2 %908 }
 0x6b4   :  { %v911_v56 = vpop.permute.xlu1 %910  ;;  %v777_v59 = vpop.permute.xlu0 %776 }
 0x6b5   :  { %v916_v60 = vsel %vm246_vm8, %v911_v56, 0  ;;  %v782_v61 = vsel %vm246_vm8, %v777_v59, 0 }
 0x6b6   :  { %791 = vmatpush.bf16.xpose.msrb.mxu1 %v782_v61 }
 0x6bc   :  { %v842_v62 = vpop.permute.xlu0 %841 }
 0x6bd   :  { %1226 = vmatmul.msk.bf16.vlgmr.msrb.gmra.mxu1 %vm246_vm8, %v775_v52  ;;  %1228 = vmatmul.msk.bf16.vlgmr.msra.gmra.mxu2 %vm246_vm8, %v842_v62 }
 0x6be   :  { %925 = vmatpush.bf16.xpose.msra.mxu1 %v916_v60 }
 0x6cd   :  { %v726_v0 = vpop.f32.mrf.mxu2  ;;  %1230 = vmatmul.msk.bf16.vlgmr.msra.gmra.mxu1 %vm246_vm8, %v909_v63 }
 0x6ce   :  { %v727_v1 = vadd.f32 %v726_v0, %v1728_v19 }
 0x6d0   :  { %v731_v50 = vsel %vm267_vm9, %v727_v1, -inf }
 0x6d1   :  { %732 = vmax.xlane.f32.xlu2 %v731_v50 }
 0x6d5   :  { %v728_v51 = vpop.f32.mrf.mxu2 }
 0x6d6   :  { %v729_v2 = vadd.f32 %v728_v51, %v1732_v23 }
 0x6d8   :  { %v734_v3 = vsel %vm267_vm9, %v729_v2, -inf }
 0x6d9   :  { %735 = vmax.xlane.f32.xlu1 %v734_v3 }
 0x73a   :  { %v793_v4 = vpop.f32.mrf.mxu1 }
 0x73b   :  { %v794_v6 = vadd.f32 %v793_v4, %v1728_v19 }
 0x73d   :  { %v798_v7 = vsel %vm267_vm9, %v794_v6, -inf }
 0x73e   :  { %799 = vmax.xlane.f32.xlu1 %v798_v7 }
 0x740   :  { %v860_v9 = vpop.f32.mrf.mxu2 }
 0x741   :  { %v861_v11 = vadd.f32 %v860_v9, %v1728_v19 }
 0x742   :  { %v795_v8 = vpop.f32.mrf.mxu1 }
 0x743   :  { %v796_v12 = vadd.f32 %v795_v8, %v1732_v23  ;;  %v865_v13 = vsel %vm267_vm9, %v861_v11, -inf }
 0x744   :  { %v733_v14 = vpop.xlane.xlu2 %732 }
 0x745   :  { %v801_v53 = vsel %vm267_vm9, %v796_v12, -inf  ;;  %v737_v18 = vsub.f32 %v727_v1, %v733_v14 }
 0x746   :  { %802 = vmax.xlane.f32.xlu0 %v801_v53  ;;  %866 = vmax.xlane.f32.xlu1 %v865_v13 }
 0x747   :  { %v739_v24 = vmul.f32 1.442695, %v737_v18 }
 0x748   :  { %v862_v15 = vpop.f32.mrf.mxu2 }
 0x749   :  { %v863_v16 = vadd.f32 %v862_v15, %v1732_v23  ;;  %1367 = vpow2.f32 %v739_v24 }
 0x74a   :  { %v927_v17 = vpop.f32.mrf.mxu1 }
 0x74b   :  { %v868_v22 = vsel %vm267_vm9, %v863_v16, -inf  ;;  %v928_v26 = vadd.f32 %v927_v17, %v1728_v19 }
 0x74c   :  { %v736_v20 = vpop.xlane.xlu1 %735 }
 0x74d   :  { %v738_v21 = vsub.f32 %v729_v2, %v736_v20  ;;  %v932_v29 = vsel %vm267_vm9, %v928_v26, -inf }
 0x74e   :  { %869 = vmax.xlane.f32.xlu0 %v868_v22 }
 0x74f   :  { %v741_v25 = vmul.f32 1.442695, %v738_v21  ;;  %v1368_v31 = vpop.eup %1367 }
 0x750   :  { %v743_v34 = vsel %vm267_vm9, %v1368_v31, 0.0 }
 0x751   :  { %1369 = vpow2.f32 %v741_v25 }
 0x752   :  { %v929_v27 = vpop.f32.mrf.mxu1 }
 0x753   :  { %v930_v28 = vadd.f32 %v929_v27, %v1732_v23 }
 0x755   :  { %v935_v30 = vsel %vm267_vm9, %v930_v28, -inf }
 0x756   :  { %933 = vmax.xlane.f32.xlu0 %v932_v29  ;;  %936 = vmax.xlane.f32.xlu2 %v935_v30 }
 0x757   :  { %v1370_v32 = vpop.eup %1369 }
 0x758   :  { %v746_v33 = vsel %vm267_vm9, %v1370_v32, 0.0 }
 0x75e   :  { %747 = vadd.xlane.f32.xlu2 %v746_v33  ;;  %744 = vadd.xlane.f32.xlu0 %v743_v34 }
 0x75f   :  { %821 = vrot.lane.b32.xlu1 %v1813_v48, %s1596_s12 }
 0x772   :  { %754 = vrot.lane.b32.xlu0 %v1813_v48, %s1594_s8 }
 0x7b1   :  { %v800_v19 = vpop.xlane.xlu1 %799 }
 0x7b2   :  { %v804_v23 = vsub.f32 %v794_v6, %v800_v19 }
 0x7b4   :  { %v806_v35 = vmul.f32 1.442695, %v804_v23 }
 0x7b6   :  { %1371 = vpow2.f32 %v806_v35 }
 0x7b9   :  { %v803_v36 = vpop.xlane.xlu0 %802  ;;  %v867_v37 = vpop.xlane.xlu1 %866 }
 0x7ba   :  { %v805_v38 = vsub.f32 %v796_v12, %v803_v36  ;;  %v871_v39 = vsub.f32 %v861_v11, %v867_v37 }
 0x7bc   :  { %v1372_v40 = vpop.eup %1371  ;;  %v808_v41 = vmul.f32 1.442695, %v805_v38  ;;  %v873_v42 = vmul.f32 1.442695, %v871_v39 }
 0x7bd   :  { %v810_v43 = vsel %vm267_vm9, %v1372_v40, 0.0 }
 0x7be   :  { %1373 = vpow2.f32 %v808_v41  ;;  %811 = vadd.xlane.f32.xlu2 %v810_v43 }
 0x7bf   :  { %1375 = vpow2.f32 %v873_v42 }
 0x7c1   :  { %v870_v5 = vpop.xlane.xlu0 %869 }
 0x7c2   :  { %v872_v44 = vsub.f32 %v863_v16, %v870_v5 }
 0x7c4   :  { %v1374_v45 = vpop.eup %1373  ;;  %v875_v46 = vmul.f32 1.442695, %v872_v44  ;;  %v1266_v44 = vld [vmem:[#allocation10 + $0x18] sm:$0xff] }
 0x7c5   :  { %v1855_v47 = vpop.eup %1375  ;;  %v813_v49 = vsel %vm267_vm9, %v1374_v45, 0.0  ;;  %1028 = vmatpush.bf16.msrb.mxu2 %v1266_v44 }
 0x7c6   :  { %1377 = vpow2.f32 %v875_v46  ;;  %814 = vadd.xlane.f32.xlu1 %v813_v49  ;;  %v877_v52 = vsel %vm267_vm9, %v1855_v47, 0.0 }
 0x7c7   :  { %878 = vadd.xlane.f32.xlu2 %v877_v52 }
 0x7c9   :  { %v934_v54 = vpop.xlane.xlu0 %933  ;;  %v937_v55 = vpop.xlane.xlu2 %936 }
 0x7ca   :  { %v938_v56 = vsub.f32 %v928_v26, %v934_v54  ;;  %v939_v61 = vsub.f32 %v930_v28, %v937_v55 }
 0x7cc   :  { %v1378_v59 = vpop.eup %1377  ;;  %v940_v60 = vmul.f32 1.442695, %v938_v56  ;;  %v942_v63 = vmul.f32 1.442695, %v939_v61 }
 0x7cd   :  { %v880_v62 = vsel %vm267_vm9, %v1378_v59, 0.0 }
 0x7ce   :  { %1379 = vpow2.f32 %v940_v60  ;;  %881 = vadd.xlane.f32.xlu0 %v880_v62 }
 0x7cf   :  { %1381 = vpow2.f32 %v942_v63 }
 0x7d1   :  { %v822_v0 = vpop.permute.xlu1 %821  ;;  %v745_v50 = vpop.xlane.xlu0 %744 }
 0x7d2   :  { %834 = vmatpush.bf16.msrb.mxu3 %v822_v0  ;;  %v748_v2 = vpop.xlane.xlu2 %747  ;;  %1383 = vrcp.f32 %v745_v50 }
 0x7d3   :  { %1385 = vrcp.f32 %v748_v2  ;;  %v1882_v2 = vld [vmem:[#allocation11] sm:$0xff] }
 0x7d4   :  { %v1380_v1 = vpop.eup %1379 }
 0x7d5   :  { %v944_v51 = vsel %vm267_vm9, %v1380_v1, 0.0  ;;  %v1382_v3 = vpop.eup %1381 }
 0x7d6   :  { %945 = vadd.xlane.f32.xlu2 %v944_v51  ;;  %v947_v4 = vsel %vm267_vm9, %v1382_v3, 0.0 }
 0x7d8   :  { %v1384_v6 = vpop.eup %1383 }
 0x7d9   :  { %v1386_v7 = vpop.eup %1385  ;;  %v751_v9 = vmul.f32 %v1384_v6, %v1368_v31 }
 0x7da   :  { %v752_v11 = vmul.f32 %v1386_v7, %v1370_v32 }
 0x7dc   :  { %v753_v12 = vpack.c.bf16 %v752_v11, %v751_v9 }
 0x7de   :  { %948 = vadd.xlane.f32.xlu2 %v947_v4 }
 0x7df   :  { %955 = vrot.lane.b32.xlu1 %v1813_v48, %s1593_s5 }
 0x7e4   :  { %v755_v8 = vpop.permute.xlu0 %754 }
 0x7e5   :  { %767 = vmatpush.bf16.msrb.mxu0 %v755_v8 }
 0x7e8   :  { %1225 = vmatmul.msk.bf16.vlgmr.msrb.gmra.mxu0 %vm267_vm9, %v753_v12 }
 0x7f6   :  { %888 = vrot.lane.b32.xlu2 %v1813_v48, %s1598_s14 }
 0x831   :  { %v812_v53 = vpop.xlane.xlu2 %811 }
 0x832   :  { %1387 = vrcp.f32 %v812_v53 }
 0x838   :  { %v1388_v14 = vpop.eup %1387 }
 0x839   :  { %v815_v13 = vpop.xlane.xlu1 %814  ;;  %v818_v16 = vmul.f32 %v1388_v14, %v1372_v40 }
 0x83a   :  { %1389 = vrcp.f32 %v815_v13  ;;  %v879_v18 = vpop.xlane.xlu2 %878 }
 0x840   :  { %v1390_v15 = vpop.eup %1389 }
 0x841   :  { %v819_v17 = vmul.f32 %v1390_v15, %v1374_v45  ;;  %v882_v22 = vpop.xlane.xlu0 %881  ;;  %v1265_v45 = vld [vmem:[#allocation10 + $0x10] sm:$0xff] }
 0x842   :  { %1391 = vrcp.f32 %v882_v22  ;;  %1029 = vmatpush.bf16.msrb.mxu2 %v1265_v45 }
 0x843   :  { %v820_v20 = vpack.c.bf16 %v819_v17, %v818_v16  ;;  %1393 = vrcp.f32 %v879_v18 }
 0x845   :  { %1227 = vmatmul.msk.bf16.vlgmr.msrb.gmra.mxu3 %vm267_vm9, %v820_v20 }
 0x848   :  { %v1392_v48 = vpop.eup %1391 }
 0x849   :  { %v946_v21 = vpop.xlane.xlu2 %945  ;;  %v1394_v26 = vpop.eup %1393  ;;  %v886_v28 = vmul.f32 %v1392_v48, %v1378_v59 }
 0x84a   :  { %1395 = vrcp.f32 %v946_v21  ;;  %v885_v30 = vmul.f32 %v1394_v26, %v1855_v47  ;;  %v1267_v26 = vld [vmem:[#allocation10 + $0x20] sm:$0xff] }
 0x84c   :  { %v887_v34 = vpack.c.bf16 %v886_v28, %v885_v30 }
 0x850   :  { %v1396_v27 = vpop.eup %1395 }
 0x851   :  { %v956_v24 = vpop.permute.xlu1 %955  ;;  %v949_v25 = vpop.xlane.xlu2 %948  ;;  %v952_v31 = vmul.f32 %v1396_v27, %v1380_v1 }
 0x852   :  { %1397 = vrcp.f32 %v949_v25  ;;  %968 = vmatpush.bf16.msra.mxu3 %v956_v24 }
 0x858   :  { %v1398_v29 = vpop.eup %1397 }
 0x859   :  { %v953_v32 = vmul.f32 %v1398_v29, %v1382_v3  ;;  %v889_v33 = vpop.permute.xlu2 %888  ;;  %v1006_v3 = vperm.slane %v1882_v2, 7 }
 0x85a   :  { %901 = vmatpush.bf16.msra.mxu0 %v889_v33 }
 0x85b   :  { %v954_v19 = vpack.c.bf16 %v953_v32, %v952_v31 }
 0x85d   :  { %1229 = vmatmul.msk.bf16.vlgmr.msra.gmra.mxu0 %vm267_vm9, %v887_v34  ;;  %1231 = vmatmul.msk.bf16.vlgmr.msra.gmra.mxu3 %vm267_vm9, %v954_v19 }
 0x865   :  { %v769_v23 = vpop.f32.mrf.mxu0 }
 0x86d   :  { %v771_v38 = vpop.f32.mrf.mxu0 }
 0x8c8   :  { %v836_v35 = vpop.f32.mrf.mxu3 }
 0x8d0   :  { %v838_v36 = vpop.f32.mrf.mxu3 }
 0x8d1   :  { %v1310_v37 = vpack.i.bf16 %v838_v36, %v836_v35 }
 0x8d3   :  { %1311 = vrot.lane.b32.xlu1 %v1310_v37, %s1584_s10 }
 0x8da   :  { %v903_v39 = vpop.f32.mrf.mxu0 }
 0x8e0   :  { %v970_v40 = vpop.f32.mrf.mxu3 }
 0x8e2   :  { %v905_v41 = vpop.f32.mrf.mxu0 }
 0x8e3   :  { %v1315_v42 = vpack.i.bf16 %v905_v41, %v903_v39 }
 0x8e5   :  { %1316 = vrot.lane.b32.xlu1 %v1315_v42, %s1604_s18 }
 0x8e8   :  { %v972_v43 = vpop.f32.mrf.mxu3 }
 0x8e9   :  { %v1320_v5 = vpack.i.bf16 %v972_v43, %v970_v40  ;;  %v1085_v43 = vperm.slane %v1882_v2, 5 }
 0x8ed   :  { %1321 = vrot.lane.b32.xlu1 %v1320_v5, %s1603_s17 }
 0x945   :  { %v1312_v46 = vpop.permute.xlu1 %1311 }
 0x946   :  { %v1314_v49 = vunpack.i.h.bf16 %v1312_v46  ;;  %v1313_v52 = vunpack.i.l.bf16 %v1312_v46 }
 0x948   :  { %v1000_v59 = vsel %vm246_vm8, %v771_v38, %v1314_v49  ;;  %v999_v60 = vsel %vm246_vm8, %v769_v23, %v1313_v52  ;;  %v1270_v52 = vld [vmem:[#allocation10 + $0x38] sm:$0xff] }
 0x949   :  { %1154 = vmatpush.bf16.msrb.mxu1 %v1270_v52 }
 0x957   :  { %v1317_v47 = vpop.permute.xlu1 %1316 }
 0x958   :  { %v1319_v54 = vunpack.i.h.bf16 %v1317_v47  ;;  %v1318_v55 = vunpack.i.l.bf16 %v1317_v47 }
 0x95a   :  { %v1002_v63 = vsel %vm267_vm9, %v1000_v59, %v1319_v54  ;;  %v1001_v0 = vsel %vm267_vm9, %v999_v60, %v1318_v55  ;;  %v1269_v54 = vld [vmem:[#allocation10 + $0x30] sm:$0xff]  ;;  %v130_v55 = vld [vmem:[#allocation11 + $0x8] sm:$0x3] }
 0x95b   :  { %1155 = vmatpush.bf16.msrb.mxu1 %v1269_v54  ;;  %v1094_v59 = vperm.slane %v130_v55, 0 }
 0x95f   :  { %v1322_v56 = vpop.permute.xlu1 %1321 }
 0x960   :  { %v1324_v61 = vunpack.i.h.bf16 %v1322_v56  ;;  %v1323_v62 = vunpack.i.l.bf16 %v1322_v56 }
 0x962   :  { %v1003_v1 = vsel %vm540_vm10, %v1001_v0, %v1323_v62  ;;  %v1004_v50 = vsel %vm540_vm10, %v1002_v63, %v1324_v61 }
 0x963   :  { %v1005_v51 = vpack.c.bf16 %v1004_v50, %v1003_v1  ;;  %v1132_v50 = vperm.slane %v130_v55, 1 }
 0x965   :  { %1240 = vmatmul.msk.bf16.vlgmr.msrb.gmra.mxu2 %vm131_vm0, %v1005_v51 }
 0x9e8   :  { %v1031_v4 = vpop.f32.mrf.mxu2 }
 0x9e9   :  { %v1032_v6 = vadd.f32 %v1031_v4, %v1006_v3 }
 0x9eb   :  { %v1036_v7 = vadd.f32 %v1032_v6, %v1797_v57 }
 0x9ed   :  { %v1038_v9 = vsel %vm131_vm0, %v1036_v7, 0.0 }
 0x9ee   :  { %1039 = vadd.xlane.f32.xlu2 %v1038_v9 }
 0x9f0   :  { %v1033_v11 = vpop.f32.mrf.mxu2 }
 0x9f1   :  { %v1034_v8 = vadd.f32 %v1033_v11, %v1006_v3 }
 0x9f3   :  { %v1037_v12 = vadd.f32 %v1034_v8, %v1800_v58  ;;  %v1268_v58 = vld [vmem:[#allocation10 + $0x28] sm:$0xff] }
 0x9f4   :  { %1116 = vmatpush.bf16.msrb.mxu0 %v1268_v58 }
 0x9f5   :  { %v1041_v53 = vsel %vm131_vm0, %v1037_v12, 0.0 }
 0x9f6   :  { %1042 = vadd.xlane.f32.xlu1 %v1041_v53 }
 0x9f8   :  { %1117 = vmatpush.bf16.msrb.mxu0 %v1267_v26 }
 0xa61   :  { %v1040_v13 = vpop.xlane.xlu2 %1039 }
 0xa62   :  { %v1044_v14 = vmul.f32 %v1040_v13, %v1682_v10 }
 0xa64   :  { %v1046_v15 = vsub.f32 %v1036_v7, %v1044_v14 }
 0xa66   :  { %v1048_v16 = vmul.f32 %v1046_v15, %v1046_v15 }
 0xa68   :  { %v1050_v17 = vsel %vm131_vm0, %v1048_v16, 0.0 }
 0xa69   :  { %v1043_v18 = vpop.xlane.xlu1 %1042  ;;  %1051 = vadd.xlane.f32.xlu0 %v1050_v17 }
 0xa6a   :  { %v1045_v57 = vmul.f32 %v1043_v18, %v1682_v10 }
 0xa6c   :  { %v1047_v20 = vsub.f32 %v1037_v12, %v1045_v57 }
 0xa6e   :  { %v1049_v21 = vmul.f32 %v1047_v20, %v1047_v20 }
 0xa70   :  { %v1053_v22 = vsel %vm131_vm0, %v1049_v21, 0.0 }
 0xa71   :  { %1054 = vadd.xlane.f32.xlu0 %v1053_v22 }
 0xadc   :  { %v1052_v24 = vpop.xlane.xlu0 %1051 }
 0xadd   :  { %v1056_v25 = vmul.f32 %v1052_v24, %v1682_v10 }
 0xadf   :  { %v1058_v48 = vadd.f32 1e-05, %v1056_v25 }
 0xae1   :  { %1399 = vrsqrt.f32 %v1058_v48  ;;  %vm1066_vm3 = vweird.f32 %v1058_v48 }
 0xae4   :  { %v1055_v27 = vpop.xlane.xlu0 %1054 }
 0xae5   :  { %v1057_v28 = vmul.f32 %v1055_v27, %v1682_v10  ;;  %v1082_v10 = vperm.slane %v1882_v2, 4 }
 0xae7   :  { %v1400_v29 = vpop.eup %1399  ;;  %v1059_v30 = vadd.f32 1e-05, %v1057_v28 }
 0xae8   :  { %v1061_v31 = vmul.f32 %v1400_v29, %v1058_v48  ;;  %vm1067_vm2 = vweird.f32 %v1400_v29 }
 0xae9   :  { %1401 = vrsqrt.f32 %v1059_v30  ;;  %vm1068_vm4 = vmor %vm1066_vm3, %vm1067_vm2  ;;  %vm1076_vm6 = vweird.f32 %v1059_v30 }
 0xaea   :  { %v1062_v32 = vmul.f32 %v1400_v29, %v1061_v31 }
 0xaec   :  { %v1063_v33 = vmul.f32 0.5, %v1062_v32 }
 0xaee   :  { %v1064_v34 = vsub.f32 1.5, %v1063_v33 }
 0xaef   :  { %v1402_v19 = vpop.eup %1401 }
 0xaf0   :  { %v1065_v23 = vmul.f32 %v1400_v29, %v1064_v34  ;;  %v1071_v35 = vmul.f32 %v1402_v19, %v1059_v30  ;;  %vm1077_vm5 = vweird.f32 %v1402_v19 }
 0xaf1   :  { %vm1078_vm7 = vmor %vm1076_vm6, %vm1077_vm5 }
 0xaf2   :  { %v1072_v36 = vmul.f32 %v1402_v19, %v1071_v35  ;;  %v1069_v37 = vsel %vm1068_vm4, %v1400_v29, %v1065_v23 }
 0xaf3   :  { %v1080_v40 = vmul.f32 %v1069_v37, %v1046_v15 }
 0xaf4   :  { %v1073_v38 = vmul.f32 0.5, %v1072_v36 }
 0xaf5   :  { %v1083_v5 = vmul.f32 %v1082_v10, %v1080_v40 }
 0xaf6   :  { %v1074_v39 = vsub.f32 1.5, %v1073_v38 }
 0xaf7   :  { %v1086_v46 = vadd.f32 %v1085_v43, %v1083_v5 }
 0xaf8   :  { %v1075_v41 = vmul.f32 %v1402_v19, %v1074_v39 }
 0xafa   :  { %v1079_v42 = vsel %vm1078_vm7, %v1402_v19, %v1075_v41 }
 0xafb   :  { %v1081_v44 = vmul.f32 %v1079_v42, %v1047_v20 }
 0xafd   :  { %v1084_v45 = vmul.f32 %v1082_v10, %v1081_v44 }
 0xaff   :  { %v1087_v47 = vadd.f32 %v1085_v43, %v1084_v45 }
 0xb01   :  { %v1088_v49 = vpack.c.bf16 %v1087_v47, %v1086_v46 }
 0xb03   :  { %1249 = vmatmul.msk.bf16.vlgmr.msrb.gmra.mxu0 %vm131_vm0, %v1088_v49 }
 0xb80   :  { %v1119_v56 = vpop.f32.mrf.mxu0 }
 0xb81   :  { %v1120_v60 = vadd.f32 %v1119_v56, %v1094_v59 }
 0xb83   :  { %v1124_v63 = vmax.f32 %v1120_v60, 0.0 }
 0xb88   :  { %v1121_v61 = vpop.f32.mrf.mxu0 }
 0xb89   :  { %v1122_v62 = vadd.f32 %v1121_v61, %v1094_v59 }
 0xb8b   :  { %v1125_v0 = vmax.f32 %v1122_v62, 0.0 }
 0xb8d   :  { %v1126_v1 = vpack.c.bf16 %v1125_v0, %v1124_v63 }
 0xb8f   :  { %1258 = vmatmul.msk.bf16.vlgmr.msrb.gmra.mxu1 %vm131_vm0, %v1126_v1 }
 0xc0c   :  { %v1157_v51 = vpop.f32.mrf.mxu1 }
 0xc0d   :  { %v1158_v2 = vadd.f32 %v1157_v51, %v1132_v50 }
 0xc0f   :  { %v1162_v3 = vadd.f32 %v1158_v2, %v1086_v46 }
 0xc11   :  { %1164 = vst.msk [vmem:[#allocation13] sm:$0xff] %vm131_vm0, %v1162_v3 }
 0xc14   :  { %v1159_v4 = vpop.f32.mrf.mxu1 }
 0xc15   :  { %v1160_v6 = vadd.f32 %v1159_v4, %v1132_v50 }
 0xc17   :  { %v1163_v7 = vadd.f32 %v1160_v6, %v1087_v47 }
 0xc19   :  { %1165 = vst.msk [vmem:[#allocation13 + $0x8] sm:$0xff] %vm131_vm0, %v1163_v7 }
 0xc1a   :  { %1178 = dma.vmem_to_hbm [thread:$0]  %s1171_s20, 256, %s1173_s23, [#allocation4], %s1583_s9, %s1583_s9, %s1584_s10  }
 0xc1b   :  { %1580 = dma.done.wait [#allocation4], 256  }
 0xc1c   :  { %1581 = vsyncadd [#allocation4], 4294967040 }
 0xc1d   :  { %1183 = vsyncpa [#allocation3], 1 }
 0xc1e   :  { %1184 = vsyncpa [#allocation6], 1 }
 0xc1f   :  { %1185 = vsyncpa [#allocation9], 1 }
 0xc20   :  { %1186 = vsyncpa [#allocation12], 1 }
 0xc21   :  { %1187 = vsyncpa [#allocation4], 1 }

</bundles_post_ra>
